<compile_context>
chip_gen: v7x
topology: tpu7x:2x2x1
jax: 0.10.0
libtpu: 0.0.40
codegen_flags: <defaults>
</compile_context>

<pallas_src>
import jax
import jax.numpy as jnp
from jax.experimental import pallas as pl
from jax.experimental.pallas import tpu as pltpu


def _sigmoid(x):
    # EUP tanh (single op, separate VLIW slot) instead of exp + divide.
    return 0.5 * jnp.tanh(0.5 * x) + 0.5


def mlp_kernel(x_ref,
               w1_ref, b1_ref, w2_ref, b2_ref, w3_ref, b3_ref,
               w4_ref, b4_ref, w5_ref, b5_ref, w6_ref, b6_ref,
               o_ref):
    x = x_ref[...]                                      # (TB, 2)
    # Layer 1: K=2 -> two VPU rank-1 updates (skip the MXU entirely).
    h = _sigmoid(x[:, 0:1] * w1_ref[0:1, :]
                 + x[:, 1:2] * w1_ref[1:2, :]
                 + b1_ref[...])                         # (TB, 128)
    # Layers 2-5: proper 128x128 MXU matmuls with f32 accumulation.
    h = _sigmoid(jnp.dot(h, w2_ref[...], preferred_element_type=jnp.float32) + b2_ref[...])
    h = _sigmoid(jnp.dot(h, w3_ref[...], preferred_element_type=jnp.float32) + b3_ref[...])
    h = _sigmoid(jnp.dot(h, w4_ref[...], preferred_element_type=jnp.float32) + b4_ref[...])
    h = _sigmoid(jnp.dot(h, w5_ref[...], preferred_element_type=jnp.float32) + b5_ref[...])
    # Layer 6: N=1 -> VPU multiply + lane reduction (XLU), no MXU drain.
    o_ref[...] = jnp.sum(h * w6_ref[...], axis=-1, keepdims=True) + b6_ref[...]


def mlp_forward(x, params, *, tb=128):
    """x: (B, 2) f32.  params: list of (w, b) with w (in, out), b (1, out)."""
    B = x.shape[0]
    (w1, b1), (w2, b2), (w3, b3), (w4, b4), (w5, b5), (w6, b6) = params
    w6_row = w6.reshape(1, 128)                          # (128,1) -> (1,128) row for VPU path

    # Batch tile: multiple of 8 sublanes; cap at requested tb; pad B up to a multiple.
    tb = int(min(tb, max(8, ((B + 7) // 8) * 8)))
    b_pad = ((B + tb - 1) // tb) * tb
    if b_pad != B:
        x = jnp.pad(x, ((0, b_pad - B), (0, 0)))
    grid = (b_pad // tb,)

    const = lambda i: (0, 0)                             # weights/biases: resident in VMEM
    weight_specs = [
        pl.BlockSpec((2, 128), const),    # w1
        pl.BlockSpec((1, 128), const),    # b1
        pl.BlockSpec((128, 128), const),  # w2
        pl.BlockSpec((1, 128), const),    # b2
        pl.BlockSpec((128, 128), const),  # w3
        pl.BlockSpec((1, 128), const),    # b3
        pl.BlockSpec((128, 128), const),  # w4
        pl.BlockSpec((1, 128), const),    # b4
        pl.BlockSpec((128, 128), const),  # w5
        pl.BlockSpec((1, 128), const),    # b5
        pl.BlockSpec((1, 128), const),    # w6 (row)
        pl.BlockSpec((1, 1), const),      # b6
    ]

    out = pl.pallas_call(
        mlp_kernel,
        out_shape=jax.ShapeDtypeStruct((b_pad, 1), jnp.float32),
        grid=grid,
        in_specs=[pl.BlockSpec((tb, 2), lambda i: (i, 0))] + weight_specs,
        out_specs=pl.BlockSpec((tb, 1), lambda i: (i, 0)),
        compiler_params=pltpu.CompilerParams(
            dimension_semantics=("parallel",)),          # megacore sharding on v7x
    )(x, w1, b1, w2, b2, w3, b3, w4, b4, w5, b5, w6_row, b6)

    return out[:B]


def init_params(key):
    # Deterministic init mimicking nn.Linear's U(-1/sqrt(fan_in), 1/sqrt(fan_in)).
    dims = [(2, 128), (128, 128), (128, 128), (128, 128), (128, 128), (128, 1)]
    params = []
    for (fan_in, fan_out) in dims:
        key, kw, kb = jax.random.split(key, 3)
        bound = 1.0 / jnp.sqrt(fan_in)
        w = jax.random.uniform(kw, (fan_in, fan_out), jnp.float32, -bound, bound)
        b = jax.random.uniform(kb, (1, fan_out), jnp.float32, -bound, bound)
        params.append((w, b))
    return params


def reference_forward(x, params):
    h = x
    for i, (w, b) in enumerate(params):
        h = h @ w + b
        if i < len(params) - 1:
            h = jax.nn.sigmoid(h)
    return h


if __name__ == "__main__":
    key = jax.random.PRNGKey(0)
    key, kx = jax.random.split(key)
    B = 256                                  # exercises the batch grid (2 tiles of 128)
    x = jax.random.normal(kx, (B, 2), jnp.float32)
    params = init_params(key)

    out = mlp_forward(x, params, tb=128)
    jax.block_until_ready(out)

    ref = reference_forward(x, params)
    assert out.shape == (B, 1)
    assert jnp.allclose(out, ref, atol=1e-5, rtol=1e-5), float(jnp.max(jnp.abs(out - ref)))
    print("KERNEL_OK")
</pallas_src>

<mosaic_0001>
module attributes {stable_mosaic.version = 11 : i64} {
  func.func @mlp_kernel(%arg0: i32, %arg1: memref<128x2xf32, #tpu.memory_space<vmem>>, %arg2: memref<2x128xf32, #tpu.memory_space<vmem>>, %arg3: memref<1x128xf32, #tpu.memory_space<vmem>>, %arg4: memref<128x128xf32, #tpu.memory_space<vmem>>, %arg5: memref<1x128xf32, #tpu.memory_space<vmem>>, %arg6: memref<128x128xf32, #tpu.memory_space<vmem>>, %arg7: memref<1x128xf32, #tpu.memory_space<vmem>>, %arg8: memref<128x128xf32, #tpu.memory_space<vmem>>, %arg9: memref<1x128xf32, #tpu.memory_space<vmem>>, %arg10: memref<128x128xf32, #tpu.memory_space<vmem>>, %arg11: memref<1x128xf32, #tpu.memory_space<vmem>>, %arg12: memref<1x128xf32, #tpu.memory_space<vmem>>, %arg13: memref<1x1xf32, #tpu.memory_space<vmem>>, %arg14: memref<128x1xf32, #tpu.memory_space<vmem>>) attributes {dimension_semantics = [#tpu.dimension_semantics<parallel>], iteration_bounds = array<i64: 2>, scalar_prefetch = 0 : i64, scratch_operands = 0 : i64, tpu.core_type = #tpu.core_type<tc>, window_params = [{transform_indices = @transform_0, window_bounds = array<i64: 128, 2>}, {pipeline_mode = #tpu.pipeline_mode<synchronous>, transform_indices = @transform_1, window_bounds = array<i64: 2, 128>}, {pipeline_mode = #tpu.pipeline_mode<synchronous>, transform_indices = @transform_2, window_bounds = array<i64: 1, 128>}, {pipeline_mode = #tpu.pipeline_mode<synchronous>, transform_indices = @transform_3, window_bounds = array<i64: 128, 128>}, {pipeline_mode = #tpu.pipeline_mode<synchronous>, transform_indices = @transform_4, window_bounds = array<i64: 1, 128>}, {pipeline_mode = #tpu.pipeline_mode<synchronous>, transform_indices = @transform_5, window_bounds = array<i64: 128, 128>}, {pipeline_mode = #tpu.pipeline_mode<synchronous>, transform_indices = @transform_6, window_bounds = array<i64: 1, 128>}, {pipeline_mode = #tpu.pipeline_mode<synchronous>, transform_indices = @transform_7, window_bounds = array<i64: 128, 128>}, {pipeline_mode = #tpu.pipeline_mode<synchronous>, transform_indices = @transform_8, window_bounds = array<i64: 1, 128>}, {pipeline_mode = #tpu.pipeline_mode<synchronous>, transform_indices = @transform_9, window_bounds = array<i64: 128, 128>}, {pipeline_mode = #tpu.pipeline_mode<synchronous>, transform_indices = @transform_10, window_bounds = array<i64: 1, 128>}, {pipeline_mode = #tpu.pipeline_mode<synchronous>, transform_indices = @transform_11, window_bounds = array<i64: 1, 128>}, {pipeline_mode = #tpu.pipeline_mode<synchronous>, transform_indices = @transform_12, window_bounds = array<i64: 1, 1>}, {transform_indices = @transform_13, window_bounds = array<i64: 128, 1>}]} {
    %c0 = arith.constant 0 : index
    %c0_0 = arith.constant 0 : index
    %0 = vector.load %arg1[%c0, %c0_0] : memref<128x2xf32, #tpu.memory_space<vmem>>, vector<128x2xf32>
    %1 = vector.extract_strided_slice %0 {offsets = [0, 0], sizes = [128, 1], strides = [1, 1]} : vector<128x2xf32> to vector<128x1xf32>
    %c0_1 = arith.constant 0 : index
    %c0_2 = arith.constant 0 : index
    %2 = vector.load %arg2[%c0_1, %c0_2] : memref<2x128xf32, #tpu.memory_space<vmem>>, vector<1x128xf32>
    %3 = vector.broadcast %1 : vector<128x1xf32> to vector<128x128xf32>
    %4 = vector.broadcast %2 : vector<1x128xf32> to vector<128x128xf32>
    %5 = arith.mulf %3, %4 : vector<128x128xf32>
    %6 = vector.extract_strided_slice %0 {offsets = [0, 1], sizes = [128, 1], strides = [1, 1]} : vector<128x2xf32> to vector<128x1xf32>
    %c1 = arith.constant 1 : index
    %c0_3 = arith.constant 0 : index
    %7 = vector.load %arg2[%c1, %c0_3] : memref<2x128xf32, #tpu.memory_space<vmem>>, vector<1x128xf32>
    %8 = vector.broadcast %6 : vector<128x1xf32> to vector<128x128xf32>
    %9 = vector.broadcast %7 : vector<1x128xf32> to vector<128x128xf32>
    %10 = arith.mulf %8, %9 : vector<128x128xf32>
    %11 = arith.addf %5, %10 : vector<128x128xf32>
    %c0_4 = arith.constant 0 : index
    %c0_5 = arith.constant 0 : index
    %12 = vector.load %arg3[%c0_4, %c0_5] : memref<1x128xf32, #tpu.memory_space<vmem>>, vector<1x128xf32>
    %13 = vector.broadcast %12 : vector<1x128xf32> to vector<128x128xf32>
    %14 = arith.addf %11, %13 : vector<128x128xf32>
    %cst = arith.constant 5.000000e-01 : f32
    %15 = vector.broadcast %cst : f32 to vector<128x128xf32>
    %16 = arith.mulf %15, %14 : vector<128x128xf32>
    %17 = math.tanh %16 : vector<128x128xf32>
    %cst_6 = arith.constant 5.000000e-01 : f32
    %18 = vector.broadcast %cst_6 : f32 to vector<128x128xf32>
    %19 = arith.mulf %18, %17 : vector<128x128xf32>
    %cst_7 = arith.constant 5.000000e-01 : f32
    %20 = vector.broadcast %cst_7 : f32 to vector<128x128xf32>
    %21 = arith.addf %19, %20 : vector<128x128xf32>
    %c0_8 = arith.constant 0 : index
    %c0_9 = arith.constant 0 : index
    %22 = vector.load %arg4[%c0_8, %c0_9] : memref<128x128xf32, #tpu.memory_space<vmem>>, vector<128x128xf32>
    %cst_10 = arith.constant dense<0.000000e+00> : vector<128x128xf32>
    %23 = tpu.matmul %21, %22, %cst_10 {dimension_numbers = #tpu.dot_dimension_numbers<[1], [0], [0], [1], [0, 0, 1, 1], [], []>} : vector<128x128xf32>, vector<128x128xf32>, vector<128x128xf32> -> vector<128x128xf32>
    %c0_11 = arith.constant 0 : index
    %c0_12 = arith.constant 0 : index
    %24 = vector.load %arg5[%c0_11, %c0_12] : memref<1x128xf32, #tpu.memory_space<vmem>>, vector<1x128xf32>
    %25 = vector.broadcast %24 : vector<1x128xf32> to vector<128x128xf32>
    %26 = arith.addf %23, %25 : vector<128x128xf32>
    %cst_13 = arith.constant 5.000000e-01 : f32
    %27 = vector.broadcast %cst_13 : f32 to vector<128x128xf32>
    %28 = arith.mulf %27, %26 : vector<128x128xf32>
    %29 = math.tanh %28 : vector<128x128xf32>
    %cst_14 = arith.constant 5.000000e-01 : f32
    %30 = vector.broadcast %cst_14 : f32 to vector<128x128xf32>
    %31 = arith.mulf %30, %29 : vector<128x128xf32>
    %cst_15 = arith.constant 5.000000e-01 : f32
    %32 = vector.broadcast %cst_15 : f32 to vector<128x128xf32>
    %33 = arith.addf %31, %32 : vector<128x128xf32>
    %c0_16 = arith.constant 0 : index
    %c0_17 = arith.constant 0 : index
    %34 = vector.load %arg6[%c0_16, %c0_17] : memref<128x128xf32, #tpu.memory_space<vmem>>, vector<128x128xf32>
    %cst_18 = arith.constant dense<0.000000e+00> : vector<128x128xf32>
    %35 = tpu.matmul %33, %34, %cst_18 {dimension_numbers = #tpu.dot_dimension_numbers<[1], [0], [0], [1], [0, 0, 1, 1], [], []>} : vector<128x128xf32>, vector<128x128xf32>, vector<128x128xf32> -> vector<128x128xf32>
    %c0_19 = arith.constant 0 : index
    %c0_20 = arith.constant 0 : index
    %36 = vector.load %arg7[%c0_19, %c0_20] : memref<1x128xf32, #tpu.memory_space<vmem>>, vector<1x128xf32>
    %37 = vector.broadcast %36 : vector<1x128xf32> to vector<128x128xf32>
    %38 = arith.addf %35, %37 : vector<128x128xf32>
    %cst_21 = arith.constant 5.000000e-01 : f32
    %39 = vector.broadcast %cst_21 : f32 to vector<128x128xf32>
    %40 = arith.mulf %39, %38 : vector<128x128xf32>
    %41 = math.tanh %40 : vector<128x128xf32>
    %cst_22 = arith.constant 5.000000e-01 : f32
    %42 = vector.broadcast %cst_22 : f32 to vector<128x128xf32>
    %43 = arith.mulf %42, %41 : vector<128x128xf32>
    %cst_23 = arith.constant 5.000000e-01 : f32
    %44 = vector.broadcast %cst_23 : f32 to vector<128x128xf32>
    %45 = arith.addf %43, %44 : vector<128x128xf32>
    %c0_24 = arith.constant 0 : index
    %c0_25 = arith.constant 0 : index
    %46 = vector.load %arg8[%c0_24, %c0_25] : memref<128x128xf32, #tpu.memory_space<vmem>>, vector<128x128xf32>
    %cst_26 = arith.constant dense<0.000000e+00> : vector<128x128xf32>
    %47 = tpu.matmul %45, %46, %cst_26 {dimension_numbers = #tpu.dot_dimension_numbers<[1], [0], [0], [1], [0, 0, 1, 1], [], []>} : vector<128x128xf32>, vector<128x128xf32>, vector<128x128xf32> -> vector<128x128xf32>
    %c0_27 = arith.constant 0 : index
    %c0_28 = arith.constant 0 : index
    %48 = vector.load %arg9[%c0_27, %c0_28] : memref<1x128xf32, #tpu.memory_space<vmem>>, vector<1x128xf32>
    %49 = vector.broadcast %48 : vector<1x128xf32> to vector<128x128xf32>
    %50 = arith.addf %47, %49 : vector<128x128xf32>
    %cst_29 = arith.constant 5.000000e-01 : f32
    %51 = vector.broadcast %cst_29 : f32 to vector<128x128xf32>
    %52 = arith.mulf %51, %50 : vector<128x128xf32>
    %53 = math.tanh %52 : vector<128x128xf32>
    %cst_30 = arith.constant 5.000000e-01 : f32
    %54 = vector.broadcast %cst_30 : f32 to vector<128x128xf32>
    %55 = arith.mulf %54, %53 : vector<128x128xf32>
    %cst_31 = arith.constant 5.000000e-01 : f32
    %56 = vector.broadcast %cst_31 : f32 to vector<128x128xf32>
    %57 = arith.addf %55, %56 : vector<128x128xf32>
    %c0_32 = arith.constant 0 : index
    %c0_33 = arith.constant 0 : index
    %58 = vector.load %arg10[%c0_32, %c0_33] : memref<128x128xf32, #tpu.memory_space<vmem>>, vector<128x128xf32>
    %cst_34 = arith.constant dense<0.000000e+00> : vector<128x128xf32>
    %59 = tpu.matmul %57, %58, %cst_34 {dimension_numbers = #tpu.dot_dimension_numbers<[1], [0], [0], [1], [0, 0, 1, 1], [], []>} : vector<128x128xf32>, vector<128x128xf32>, vector<128x128xf32> -> vector<128x128xf32>
    %c0_35 = arith.constant 0 : index
    %c0_36 = arith.constant 0 : index
    %60 = vector.load %arg11[%c0_35, %c0_36] : memref<1x128xf32, #tpu.memory_space<vmem>>, vector<1x128xf32>
    %61 = vector.broadcast %60 : vector<1x128xf32> to vector<128x128xf32>
    %62 = arith.addf %59, %61 : vector<128x128xf32>
    %cst_37 = arith.constant 5.000000e-01 : f32
    %63 = vector.broadcast %cst_37 : f32 to vector<128x128xf32>
    %64 = arith.mulf %63, %62 : vector<128x128xf32>
    %65 = math.tanh %64 : vector<128x128xf32>
    %cst_38 = arith.constant 5.000000e-01 : f32
    %66 = vector.broadcast %cst_38 : f32 to vector<128x128xf32>
    %67 = arith.mulf %66, %65 : vector<128x128xf32>
    %cst_39 = arith.constant 5.000000e-01 : f32
    %68 = vector.broadcast %cst_39 : f32 to vector<128x128xf32>
    %69 = arith.addf %67, %68 : vector<128x128xf32>
    %c0_40 = arith.constant 0 : index
    %c0_41 = arith.constant 0 : index
    %70 = vector.load %arg12[%c0_40, %c0_41] : memref<1x128xf32, #tpu.memory_space<vmem>>, vector<1x128xf32>
    %71 = vector.broadcast %70 : vector<1x128xf32> to vector<128x128xf32>
    %72 = arith.mulf %69, %71 : vector<128x128xf32>
    %cst_42 = arith.constant dense<0.000000e+00> : vector<128xf32>
    %73 = vector.multi_reduction <add>, %72, %cst_42 [1] : vector<128x128xf32> to vector<128xf32>
    %74 = vector.shape_cast %73 : vector<128xf32> to vector<128x1xf32>
    %c0_43 = arith.constant 0 : index
    %c0_44 = arith.constant 0 : index
    %75 = vector.load %arg13[%c0_43, %c0_44] : memref<1x1xf32, #tpu.memory_space<vmem>>, vector<1x1xf32>
    %76 = vector.broadcast %75 : vector<1x1xf32> to vector<128x1xf32>
    %77 = arith.addf %74, %76 : vector<128x1xf32>
    %c0_45 = arith.constant 0 : index
    %c0_46 = arith.constant 0 : index
    %78 = vector.load %arg14[%c0_45, %c0_46] : memref<128x1xf32, #tpu.memory_space<vmem>>, vector<128x1xf32>
    tpu.vector_store %arg14[%c0_45, %c0_46], %77 {strides = array<i32>} : memref<128x1xf32, #tpu.memory_space<vmem>>, vector<128x1xf32>,
    return
  }
  func.func @transform_0(%arg0: i32) -> (i32, i32) {
    %c0_i32 = arith.constant 0 : i32
    %c0_i32_0 = arith.constant 0 : i32
    return %arg0, %c0_i32 : i32, i32
  }
  func.func @transform_1(%arg0: i32) -> (i32, i32) {
    %c0_i32 = arith.constant 0 : i32
    %c0_i32_0 = arith.constant 0 : i32
    %c0_i32_1 = arith.constant 0 : i32
    return %c0_i32, %c0_i32_0 : i32, i32
  }
  func.func @transform_2(%arg0: i32) -> (i32, i32) {
    %c0_i32 = arith.constant 0 : i32
    %c0_i32_0 = arith.constant 0 : i32
    %c0_i32_1 = arith.constant 0 : i32
    return %c0_i32, %c0_i32_0 : i32, i32
  }
  func.func @transform_3(%arg0: i32) -> (i32, i32) {
    %c0_i32 = arith.constant 0 : i32
    %c0_i32_0 = arith.constant 0 : i32
    %c0_i32_1 = arith.constant 0 : i32
    return %c0_i32, %c0_i32_0 : i32, i32
  }
  func.func @transform_4(%arg0: i32) -> (i32, i32) {
    %c0_i32 = arith.constant 0 : i32
    %c0_i32_0 = arith.constant 0 : i32
    %c0_i32_1 = arith.constant 0 : i32
    return %c0_i32, %c0_i32_0 : i32, i32
  }
  func.func @transform_5(%arg0: i32) -> (i32, i32) {
    %c0_i32 = arith.constant 0 : i32
    %c0_i32_0 = arith.constant 0 : i32
    %c0_i32_1 = arith.constant 0 : i32
    return %c0_i32, %c0_i32_0 : i32, i32
  }
  func.func @transform_6(%arg0: i32) -> (i32, i32) {
    %c0_i32 = arith.constant 0 : i32
    %c0_i32_0 = arith.constant 0 : i32
    %c0_i32_1 = arith.constant 0 : i32
    return %c0_i32, %c0_i32_0 : i32, i32
  }
  func.func @transform_7(%arg0: i32) -> (i32, i32) {
    %c0_i32 = arith.constant 0 : i32
    %c0_i32_0 = arith.constant 0 : i32
    %c0_i32_1 = arith.constant 0 : i32
    return %c0_i32, %c0_i32_0 : i32, i32
  }
  func.func @transform_8(%arg0: i32) -> (i32, i32) {
    %c0_i32 = arith.constant 0 : i32
    %c0_i32_0 = arith.constant 0 : i32
    %c0_i32_1 = arith.constant 0 : i32
    return %c0_i32, %c0_i32_0 : i32, i32
  }
  func.func @transform_9(%arg0: i32) -> (i32, i32) {
    %c0_i32 = arith.constant 0 : i32
    %c0_i32_0 = arith.constant 0 : i32
    %c0_i32_1 = arith.constant 0 : i32
    return %c0_i32, %c0_i32_0 : i32, i32
  }
  func.func @transform_10(%arg0: i32) -> (i32, i32) {
    %c0_i32 = arith.constant 0 : i32
    %c0_i32_0 = arith.constant 0 : i32
    %c0_i32_1 = arith.constant 0 : i32
    return %c0_i32, %c0_i32_0 : i32, i32
  }
  func.func @transform_11(%arg0: i32) -> (i32, i32) {
    %c0_i32 = arith.constant 0 : i32
    %c0_i32_0 = arith.constant 0 : i32
    %c0_i32_1 = arith.constant 0 : i32
    return %c0_i32, %c0_i32_0 : i32, i32
  }
  func.func @transform_12(%arg0: i32) -> (i32, i32) {
    %c0_i32 = arith.constant 0 : i32
    %c0_i32_0 = arith.constant 0 : i32
    %c0_i32_1 = arith.constant 0 : i32
    return %c0_i32, %c0_i32_0 : i32, i32
  }
  func.func @transform_13(%arg0: i32) -> (i32, i32) {
    %c0_i32 = arith.constant 0 : i32
    %c0_i32_0 = arith.constant 0 : i32
    return %arg0, %c0_i32 : i32, i32
  }
}

</mosaic_0001>

<bundles_post_ra>
// kernel: tpu_custom_call.1
= control target key start
LH: loop header
LB: loop body
LE: loop exit
PB: predicated region body
PF: predicated region fallthrough
CT: control target
= control target key end

     0   :  { %s3154_s0 = inlined_call_operand.vmem [shape: f32[256,2], index: 0, kind: input, shape index: {}]   ;;  %s3155_s1 = inlined_call_operand.vmem [shape: f32[2,128], index: 1, kind: input, shape index: {}]   ;;  %s3156_s2 = inlined_call_operand.vmem [shape: f32[1,128], index: 2, kind: input, shape index: {}]   ;;  %s3157_s3 = inlined_call_operand.vmem [shape: f32[128,128], index: 3, kind: input, shape index: {}]   ;;  %s3158_s4 = inlined_call_operand.vmem [shape: f32[1,128], index: 4, kind: input, shape index: {}]   ;;  %s3159_s5 = inlined_call_operand.vmem [shape: f32[128,128], index: 5, kind: input, shape index: {}]   ;;  %s3160_s6 = inlined_call_operand.vmem [shape: f32[1,128], index: 6, kind: input, shape index: {}]   ;;  %s3161_s7 = inlined_call_operand.hbm [shape: f32[128,128], index: 7, kind: input, shape index: {}]   ;;  %s3162_s8 = inlined_call_operand.vmem [shape: f32[1,128], index: 8, kind: input, shape index: {}]   ;;  %s3163_s9 = inlined_call_operand.hbm [shape: f32[128,128], index: 9, kind: input, shape index: {}]   ;;  %s3164_s10 = inlined_call_operand.vmem [shape: f32[1,128], index: 10, kind: input, shape index: {}]   ;;  %s3165_s11 = inlined_call_operand.vmem [shape: f32[1,128], index: 11, kind: input, shape index: {}]   ;;  %s3166_s12 = inlined_call_operand.<no memory space> [shape: f32[1,1], index: 12, kind: input, shape index: {}]   ;;  %s3167_s13 = inlined_call_operand.vmem [shape: f32[256,1], index: 13, kind: output, shape index: {}]  }
   0x1   :  { %v18_v0 = vstv %s3166_s12 }
   0x2   :  { %19 = vst [vmem:[#allocation2] sm:$0x1] %v18_v0 }
   0x3   :  { %20 = vsyncpa [#allocation4], 0 }
   0x4   :  { %21 = vsyncpa [#allocation6], 0  ;;  %s2735_s27 = smov 0  }
   0x5 LB: > { %s1882_s28 = sadd.s32 4294967295, %s2654_s27   ;;  %p1884_p0 = scmp.ge.s32.totalorder %s2654_s27, 1  ;;  %s2654_s27 = sphi %s2735_s27, %s27_s27  }
   0x6   : > { %p336_p1 = scmp.lt.s32.totalorder %s2654_s27, 3  ;;  %s2656_s29 = smov [#allocation3]  }
   0x7   : > { %s366_s30 = sshll.u32 %s2656_s29, 4  ;;  %p2749_p3 = scmp.eq.s32.totalorder %s1882_s28, 0  ;;  %s367_s30 = int_to_ptr.vmem [resolvable:$true] %s366_s30 }
   0x8   : > { %p2743_p2 = pnand %p1884_p0, %p336_p1  ;;  %s2657_s15 = smov [#allocation5]  }
   0x9   : > { %s3172_s14 = scalar_select %p2749_p3, 1, 0 }
   0xa   : > { %s3171_s12 = scalar_select %p2743_p2, 1, 0 }
   0xb   : > { %p2394_p4 = pneg %p2743_p2  ;;  %s382_s16 = sshll.u32 %s2657_s15, 4  ;;  %s2761_s16 = int_to_ptr.vmem [resolvable:$true] %s382_s16 }
   0xc   : > { %s2584_s20 = scalar_lea.hbm %s3161_s7, 2048 }
   0xd   : > { %p2757_p5 = pnand %p2749_p3, %p2394_p4  ;;  %p2585_p6 = scmp.ne.s32.totalorder %s3161_s7, %s2584_s20 }
   0xe   : > { %p2591_p10 = scmp.lt.u32.totalorder %s2584_s20, %s3161_s7 }
   0xf   : > { %p2586_p7 = pneg %p2757_p5 }
  0x11   : > { %p2587_p8 = pnand %p2586_p7, %p2585_p6 }
  0x13   : > { %p2588_p9 = pneg %p2587_p8 }
  0x15   : > { %p2593_p11 = pnand %p2591_p10, %p2588_p9 }
  0x17   : > { %2596 = shalt.err (!%p2593_p11)
}
  0x18   : > { %s2597_s25 = scalar_lea.vmem %s367_s30, 2048  ;;  %p2605_p1 = scmp.lt.s32.totalorder %s367_s30, %s367_s30 }
  0x19   : > { %p2598_p12 = scmp.ne.s32.totalorder %s367_s30, %s2597_s25  ;;  %p2606_p4 = scmp.lt.s32.totalorder %s2597_s25, %s2597_s25 }
  0x1b   : > { %p2600_p13 = pnand %p2598_p12, %p2586_p7  ;;  %p2607_p3 = por %p2606_p4, %p2605_p1 }
  0x1d   : > { %p2601_p0 = pneg %p2600_p13 }
  0x1f   : > { %p2608_p2 = pnand %p2607_p3, %p2601_p0 }
  0x21   : > { %2611 = shalt.err (!%p2608_p2)
}
  0x22   : > { %s2658_s26 = smov 128   ;;  %s2659_s29 = smov 8  }
  0x23   : > { %2397 = dma.hbm_to_vmem [thread:$0]  (!%p2757_p5), %s3161_s7, 2048, %s367_s30, [#allocation4], %s2658_s26, %s2658_s26, %s2659_s29  }
  0x24   : > { %s2612_s21 = scalar_lea.hbm %s3163_s9, 2048 }
  0x25   : > { %p2613_p6 = scmp.ne.s32.totalorder %s3163_s9, %s2612_s21  ;;  %p2619_p8 = scmp.lt.u32.totalorder %s2612_s21, %s3163_s9 }
  0x27   : > { %p2615_p2 = pnand %p2613_p6, %p2586_p7 }
  0x29   : > { %p2616_p3 = pneg %p2615_p2 }
  0x2b   : > { %p2621_p9 = pnand %p2619_p8, %p2616_p3 }
  0x2d   : > { %2624 = shalt.err (!%p2621_p9)
}
  0x2e   : > { %s2625_s30 = scalar_lea.vmem %s2761_s16, 2048  ;;  %p2633_p13 = scmp.lt.s32.totalorder %s2761_s16, %s2761_s16 }
  0x2f   : > { %p2626_p10 = scmp.ne.s32.totalorder %s2761_s16, %s2625_s30  ;;  %p2634_p0 = scmp.lt.s32.totalorder %s2625_s30, %s2625_s30 }
  0x31   : > { %p2628_p11 = pnand %p2626_p10, %p2586_p7  ;;  %p2635_p1 = por %p2634_p0, %p2633_p13 }
  0x33   : > { %p2629_p12 = pneg %p2628_p11 }
  0x35   : > { %p2636_p4 = pnand %p2635_p1, %p2629_p12 }
  0x37   : > { %2639 = shalt.err (!%p2636_p4)
}
  0x38   : > { %2400 = dma.hbm_to_vmem [thread:$0]  (!%p2757_p5), %s3163_s9, 2048, %s2761_s16, [#allocation6], %s2658_s26, %s2658_s26, %s2659_s29  }
  0x39   : > { %p3174_p6 = scmp.ne.s32.totalorder %s3171_s12, 0 }
  0x3a   : > { %p3175_p2 = scmp.ne.s32.totalorder (!%p3174_p6), %s3172_s14, 0 }
  0x3b   : > { %416 = sbr.rel (%p3174_p6) target bundleno = 1367 (0x557), region = 72 }
  0x42   : > { %2645 = dma.done.wait (%p3175_p2), [#allocation4], 2048  }
  0x43   : > { %2647 = vsyncadd (%p3175_p2), [#allocation4], 4294965248 }
  0x44   : > { %2649 = dma.done.wait (%p3175_p2), [#allocation6], 2048  }
  0x45   : > { %2651 = vsyncadd (%p3175_p2), [#allocation6], 4294965248  ;;  %s1891_s17 = sshll.u32 %s1882_s28, 4  ;;  %v2660_v1 = vmov 0   ;;  %v2661_v4 = vmov 1   ;;  %v781_v5 = vld [vmem:[%s3157_s3] sm:$0xff] }
  0x46   : > { %2421 = vset.pattern.permute.xlu1 %v2660_v1  ;;  %2419 = vset.pattern.permute.xlu0 %v2660_v1  ;;  %p465_p5 = scmp.lt.s32.totalorder %s1891_s17, 31  ;;  %v782_v6 = vld [vmem:[%s3157_s3 + $0x8] sm:$0xff]  ;;  %v783_v8 = vld [vmem:[%s3157_s3 + $0x10] sm:$0xff]  ;;  %v784_v9 = vld [vmem:[%s3157_s3 + $0x18] sm:$0xff]  ;;  %vm1787_vm0 = vcmask 7168  }
  0x47   : > { %v2258_v7 = vpack.c.bf16 %v782_v6, %v781_v5  ;;  %v2262_v11 = vpack.c.bf16 %v784_v9, %v783_v8  ;;  %v785_v12 = vld [vmem:[%s3157_s3 + $0x20] sm:$0xff]  ;;  %v786_v13 = vld [vmem:[%s3157_s3 + $0x28] sm:$0xff]  ;;  %v787_v16 = vld [vmem:[%s3157_s3 + $0x30] sm:$0xff] }
  0x48   : > { %s3177_s17 = smov (!%p465_p5, %s1891_s17), 31  ;;  %v2266_v14 = vpack.c.bf16 %v786_v13, %v785_v12  ;;  %v788_v17 = vld [vmem:[%s3157_s3 + $0x38] sm:$0xff]  ;;  %v789_v20 = vld [vmem:[%s3157_s3 + $0x40] sm:$0xff]  ;;  %v790_v21 = vld [vmem:[%s3157_s3 + $0x48] sm:$0xff] }
  0x49   : > { %s1892_s12 = sshll.u32 %s3177_s17, 3  ;;  %2259 = vmatprep.subr.bf16.mxu0 %v2258_v7  ;;  %v2270_v18 = vpack.c.bf16 %v788_v17, %v787_v16  ;;  %v2274_v22 = vpack.c.bf16 %v790_v21, %v789_v20  ;;  %v791_v24 = vld [vmem:[%s3157_s3 + $0x50] sm:$0xff]  ;;  %v792_v25 = vld [vmem:[%s3157_s3 + $0x58] sm:$0xff]  ;;  %v793_v28 = vld [vmem:[%s3157_s3 + $0x60] sm:$0xff] }
  0x4a   : > { %s2830_s29 = scalar_lea.vmem %s3154_s0, %s1892_s12  ;;  %2261 = vmatpush3.bf16.msra.mxu0 %v2258_v7  ;;  %v2278_v26 = vpack.c.bf16 %v792_v25, %v791_v24  ;;  %v794_v29 = vld [vmem:[%s3157_s3 + $0x68] sm:$0xff]  ;;  %v795_v32 = vld [vmem:[%s3157_s3 + $0x70] sm:$0xff]  ;;  %v796_v33 = vld [vmem:[%s3157_s3 + $0x78] sm:$0xff]  ;;  %s3117_s30 = scalar_lea.vmem %s3167_s13, %s1892_s12 }
  0x4b   : > { %v477_v2 = vld [vmem:[%s2830_s29 + $0x8] sm:$0xff]  ;;  %v476_v3 = vld [vmem:[%s2830_s29] sm:$0xff]  ;;  %v478_v10 = vld [vmem:[%s2830_s29 + $0x10] sm:$0xff]  ;;  %2263 = vmatprep.subr.bf16.mxu0 %v2262_v11  ;;  %v2282_v30 = vpack.c.bf16 %v794_v29, %v793_v28  ;;  %v2286_v34 = vpack.c.bf16 %v796_v33, %v795_v32 }
  0x4c   : > { %500 = vperm.xlu1 %2421, %v477_v2   ;;  %495 = vperm.xlu0 %2419, %v476_v3   ;;  %v479_v15 = vld [vmem:[%s2830_s29 + $0x18] sm:$0xff]  ;;  %v480_v19 = vld [vmem:[%s2830_s29 + $0x20] sm:$0xff]  ;;  %v481_v23 = vld [vmem:[%s2830_s29 + $0x28] sm:$0xff] }
  0x4d   : > { %v482_v27 = vld [vmem:[%s2830_s29 + $0x30] sm:$0xff]  ;;  %v483_v31 = vld [vmem:[%s2830_s29 + $0x38] sm:$0xff]  ;;  %v484_v35 = vld [vmem:[%s2830_s29 + $0x40] sm:$0xff] }
  0x4e   : > { %2265 = vmatpush3.bf16.msra.mxu0 %v2262_v11  ;;  %v485_v36 = vld [vmem:[%s2830_s29 + $0x48] sm:$0xff]  ;;  %v486_v37 = vld [vmem:[%s2830_s29 + $0x50] sm:$0xff]  ;;  %v487_v38 = vld [vmem:[%s2830_s29 + $0x58] sm:$0xff] }
  0x4f   : > { %2267 = vmatprep.subr.bf16.mxu0 %v2266_v14  ;;  %v488_v39 = vld [vmem:[%s2830_s29 + $0x60] sm:$0xff]  ;;  %v489_v40 = vld [vmem:[%s2830_s29 + $0x68] sm:$0xff]  ;;  %v490_v41 = vld [vmem:[%s2830_s29 + $0x70] sm:$0xff] }
  0x50   : > { %2422 = vset.pattern.permute.xlu1 %v2661_v4  ;;  %2420 = vset.pattern.permute.xlu0 %v2661_v4  ;;  %v491_v42 = vld [vmem:[%s2830_s29 + $0x78] sm:$0xff]  ;;  %v1013_v43 = vld [vmem:[%s3159_s5] sm:$0xff]  ;;  %v1014_v44 = vld [vmem:[%s3159_s5 + $0x8] sm:$0xff] }
  0x51   : > { %599 = vperm.xlu1 %2422, %v477_v2   ;;  %595 = vperm.xlu0 %2420, %v476_v3   ;;  %v1015_v45 = vld [vmem:[%s3159_s5 + $0x10] sm:$0xff]  ;;  %v2290_v46 = vpack.c.bf16 %v1014_v44, %v1013_v43  ;;  %v1016_v47 = vld [vmem:[%s3159_s5 + $0x18] sm:$0xff]  ;;  %v1017_v49 = vld [vmem:[%s3159_s5 + $0x20] sm:$0xff] }
  0x52   : > { %2269 = vmatpush3.bf16.msra.mxu0 %v2266_v14  ;;  %v2294_v48 = vpack.c.bf16 %v1016_v47, %v1015_v45  ;;  %v1018_v50 = vld [vmem:[%s3159_s5 + $0x28] sm:$0xff]  ;;  %v2917_v54 = vld [vmem:[%s3155_s1] ss:$0 sm:$0xff]  ;;  %v2922_v55 = vld [vmem:[%s3155_s1 + $0x1] ss:$0 sm:$0xff] }
  0x53   : > { %2271 = vmatprep.subr.bf16.mxu0 %v2270_v18  ;;  %2291 = vmatprep.subr.bf16.mxu1 %v2290_v46  ;;  %v2298_v51 = vpack.c.bf16 %v1018_v50, %v1017_v49  ;;  %v2931_v62 = vld [vmem:[%s3156_s2] ss:$0 sm:$0xff] }
  0x54   : > { %2293 = vmatpush3.bf16.msra.mxu1 %v2290_v46 }
  0x55   : > { %2423 = vset.pattern.permute.xlu1 %v2660_v1  ;;  %603 = vperm.xlu0 %2420, %v478_v10  }
  0x56   : > { %505 = vperm.xlu1 %2423, %v478_v10   ;;  %2273 = vmatpush3.bf16.msra.mxu0 %v2270_v18 }
  0x57   : > { %2275 = vmatprep.subr.bf16.mxu0 %v2274_v22  ;;  %2295 = vmatprep.subr.bf16.mxu1 %v2294_v48 }
  0x58   : > { %2297 = vmatpush3.bf16.msra.mxu1 %v2294_v48 }
  0x59   : > { %607 = vperm.xlu0 %2420, %v479_v15   ;;  %2299 = vmatprep.subr.bf16.mxu1 %v2298_v51 }
  0x5a   : > { %510 = vperm.xlu1 %2423, %v479_v15   ;;  %2277 = vmatpush3.bf16.msra.mxu0 %v2274_v22 }
  0x5b   : > { %2279 = vmatprep.subr.bf16.mxu0 %v2278_v26 }
  0x5c   : > { %2301 = vmatpush3.bf16.msra.mxu1 %v2298_v51 }
  0x5d   : > { %611 = vperm.xlu0 %2420, %v480_v19  }
  0x5e   : > { %515 = vperm.xlu1 %2423, %v480_v19   ;;  %2281 = vmatpush3.bf16.msra.mxu0 %v2278_v26 }
  0x5f   : > { %2283 = vmatprep.subr.bf16.mxu0 %v2282_v30 }
  0x61   : > { %615 = vperm.xlu0 %2420, %v481_v23  }
  0x62   : > { %520 = vperm.xlu1 %2423, %v481_v23   ;;  %2285 = vmatpush3.bf16.msra.mxu0 %v2282_v30 }
  0x63   : > { %2287 = vmatprep.subr.bf16.mxu0 %v2286_v34 }
  0x65   : > { %619 = vperm.xlu0 %2420, %v482_v27  }
  0x66   : > { %525 = vperm.xlu1 %2423, %v482_v27   ;;  %2289 = vmatpush3.bf16.msra.mxu0 %v2286_v34 }
  0x69   : > { %623 = vperm.xlu0 %2420, %v483_v31  }
  0x6a   : > { %530 = vperm.xlu1 %2423, %v483_v31  }
  0x6d   : > { %627 = vperm.xlu0 %2420, %v484_v35  }
  0x6e   : > { %535 = vperm.xlu1 %2423, %v484_v35  }
  0x71   : > { %631 = vperm.xlu0 %2420, %v485_v36  }
  0x72   : > { %540 = vperm.xlu1 %2423, %v485_v36  }
  0x75   : > { %635 = vperm.xlu0 %2420, %v486_v37  }
  0x76   : > { %545 = vperm.xlu1 %2423, %v486_v37  }
  0x79   : > { %639 = vperm.xlu0 %2420, %v487_v38  }
  0x7a   : > { %550 = vperm.xlu1 %2423, %v487_v38  }
  0x7d   : > { %643 = vperm.xlu0 %2420, %v488_v39  }
  0x7e   : > { %555 = vperm.xlu1 %2423, %v488_v39  }
  0x81   : > { %647 = vperm.xlu0 %2420, %v489_v40  }
  0x82   : > { %560 = vperm.xlu1 %2423, %v489_v40  }
  0x85   : > { %651 = vperm.xlu0 %2420, %v490_v41  }
  0x86   : > { %565 = vperm.xlu1 %2423, %v490_v41  }
  0x89   : > { %655 = vperm.xlu0 %2420, %v491_v42  }
  0x8a   : > { %570 = vperm.xlu1 %2423, %v491_v42  }
  0xcb   : > { %v501_v52 = vpop.permute.xlu1 %500  ;;  %v496_v53 = vpop.permute.xlu0 %495 }
  0xcc   : > { %v578_v58 = vmul.f32 %v2917_v54, %v501_v52  ;;  %v577_v59 = vmul.f32 %v2917_v54, %v496_v53 }
  0xd0   : > { %v600_v56 = vpop.permute.xlu1 %599  ;;  %v596_v57 = vpop.permute.xlu0 %595 }
  0xd1   : > { %v663_v60 = vmul.f32 %v2922_v55, %v600_v56  ;;  %v662_v61 = vmul.f32 %v2922_v55, %v596_v57 }
  0xd3   : > { %v679_v63 = vadd.f32 %v663_v60, %v578_v58  ;;  %v678_v0 = vadd.f32 %v662_v61, %v577_v59 }
  0xd4   : > { %v604_v1 = vpop.permute.xlu0 %603 }
  0xd5   : > { %v702_v2 = vadd.f32 %v2931_v62, %v679_v63  ;;  %v664_v3 = vmul.f32 %v2922_v55, %v604_v1  ;;  %v506_v4 = vpop.permute.xlu1 %505  ;;  %v701_v5 = vadd.f32 %v2931_v62, %v678_v0 }
  0xd6   : > { %v579_v6 = vmul.f32 %v2917_v54, %v506_v4 }
  0xd7   : > { %v718_v7 = vmul.f32 0.5, %v702_v2  ;;  %v717_v8 = vmul.f32 0.5, %v701_v5 }
  0xd8   : > { %v680_v9 = vadd.f32 %v664_v3, %v579_v6  ;;  %v608_v10 = vpop.permute.xlu0 %607 }
  0xd9   : > { %2424 = vtanh.f32 %v718_v7  ;;  %v665_v11 = vmul.f32 %v2922_v55, %v608_v10  ;;  %v511_v12 = vpop.permute.xlu1 %510 }
  0xda   : > { %v703_v13 = vadd.f32 %v2931_v62, %v680_v9  ;;  %v580_v14 = vmul.f32 %v2917_v54, %v511_v12  ;;  %2426 = vtanh.f32 %v717_v8 }
  0xdc   : > { %v719_v15 = vmul.f32 0.5, %v703_v13  ;;  %v681_v16 = vadd.f32 %v665_v11, %v580_v14  ;;  %v612_v17 = vpop.permute.xlu0 %611 }
  0xdd   : > { %v666_v18 = vmul.f32 %v2922_v55, %v612_v17  ;;  %v516_v19 = vpop.permute.xlu1 %515 }
  0xde   : > { %2428 = vtanh.f32 %v719_v15  ;;  %v704_v20 = vadd.f32 %v2931_v62, %v681_v16  ;;  %v581_v21 = vmul.f32 %v2917_v54, %v516_v19 }
  0xe0   : > { %v720_v22 = vmul.f32 0.5, %v704_v20  ;;  %v682_v23 = vadd.f32 %v666_v18, %v581_v21  ;;  %v616_v24 = vpop.permute.xlu0 %615 }
  0xe1   : > { %v667_v25 = vmul.f32 %v2922_v55, %v616_v24  ;;  %v521_v26 = vpop.permute.xlu1 %520 }
  0xe2   : > { %2430 = vtanh.f32 %v720_v22  ;;  %v705_v27 = vadd.f32 %v2931_v62, %v682_v23  ;;  %v582_v28 = vmul.f32 %v2917_v54, %v521_v26 }
  0xe3   : > { %v2425_v29 = vpop.eup %2424 }
  0xe4   : > { %v2427_v30 = vpop.eup %2426  ;;  %v721_v31 = vmul.f32 0.5, %v705_v27  ;;  %v683_v32 = vadd.f32 %v667_v25, %v582_v28  ;;  %v620_v33 = vpop.permute.xlu0 %619  ;;  %v750_v34 = vmul.f32 0.5, %v2425_v29 }
  0xe5   : > { %v668_v35 = vmul.f32 %v2922_v55, %v620_v33  ;;  %v526_v36 = vpop.permute.xlu1 %525  ;;  %v749_v37 = vmul.f32 0.5, %v2427_v30 }
  0xe6   : > { %2432 = vtanh.f32 %v721_v31  ;;  %v706_v38 = vadd.f32 %v2931_v62, %v683_v32  ;;  %v583_v39 = vmul.f32 %v2917_v54, %v526_v36  ;;  %v766_v40 = vadd.f32 0.5, %v750_v34 }
  0xe7   : > { %v765_v41 = vadd.f32 0.5, %v749_v37 }
  0xe8   : > { %v2429_v42 = vpop.eup %2428  ;;  %v722_v43 = vmul.f32 0.5, %v706_v38  ;;  %v684_v44 = vadd.f32 %v668_v35, %v583_v39  ;;  %v624_v45 = vpop.permute.xlu0 %623 }
  0xe9   : > { %2066 = vmatprep.mubr.f32.mxu0 %v765_v41  ;;  %v669_v46 = vmul.f32 %v2922_v55, %v624_v45  ;;  %v531_v47 = vpop.permute.xlu1 %530  ;;  %v751_v48 = vmul.f32 0.5, %v2429_v42 }
  0xea   : > { %2434 = vtanh.f32 %v722_v43  ;;  %v707_v49 = vadd.f32 %v2931_v62, %v684_v44  ;;  %v584_v50 = vmul.f32 %v2917_v54, %v531_v47  ;;  %2067 = vmatmul.mubr.f32.vlgmr.msra.gmra.mrb[0].mxu0 %v766_v40 }
  0xeb   : > { %v767_v51 = vadd.f32 0.5, %v751_v48 }
  0xec   : > { %v2431_v52 = vpop.eup %2430  ;;  %v723_v53 = vmul.f32 0.5, %v707_v49  ;;  %v685_v56 = vadd.f32 %v669_v46, %v584_v50  ;;  %v628_v57 = vpop.permute.xlu0 %627 }
  0xed   : > { %v670_v58 = vmul.f32 %v2922_v55, %v628_v57  ;;  %v536_v59 = vpop.permute.xlu1 %535  ;;  %2069 = vmatprep.mubr.f32.mxu0 %v767_v51  ;;  %v752_v60 = vmul.f32 0.5, %v2431_v52 }
  0xee   : > { %2436 = vtanh.f32 %v723_v53  ;;  %v708_v61 = vadd.f32 %v2931_v62, %v685_v56  ;;  %v585_v63 = vmul.f32 %v2917_v54, %v536_v59 }
  0xef   : > { %v768_v0 = vadd.f32 0.5, %v752_v60 }
  0xf0   : > { %v2433_v1 = vpop.eup %2432  ;;  %v724_v2 = vmul.f32 0.5, %v708_v61  ;;  %v686_v3 = vadd.f32 %v670_v58, %v585_v63  ;;  %v632_v4 = vpop.permute.xlu0 %631 }
  0xf1   : > { %v671_v5 = vmul.f32 %v2922_v55, %v632_v4  ;;  %v541_v6 = vpop.permute.xlu1 %540  ;;  %2070 = vmatmul.mubr.f32.gmra.mrb[2].mxu0 %v768_v0  ;;  %v753_v7 = vmul.f32 0.5, %v2433_v1 }
  0xf2   : > { %2438 = vtanh.f32 %v724_v2  ;;  %v709_v8 = vadd.f32 %v2931_v62, %v686_v3  ;;  %v586_v9 = vmul.f32 %v2917_v54, %v541_v6 }
  0xf3   : > { %v769_v10 = vadd.f32 0.5, %v753_v7 }
  0xf4   : > { %v2435_v11 = vpop.eup %2434  ;;  %v725_v12 = vmul.f32 0.5, %v709_v8  ;;  %v687_v13 = vadd.f32 %v671_v5, %v586_v9  ;;  %v636_v14 = vpop.permute.xlu0 %635 }
  0xf5   : > { %v672_v15 = vmul.f32 %v2922_v55, %v636_v14  ;;  %v546_v16 = vpop.permute.xlu1 %545  ;;  %2072 = vmatprep.mubr.f32.mxu0 %v769_v10  ;;  %v754_v17 = vmul.f32 0.5, %v2435_v11 }
  0xf6   : > { %2440 = vtanh.f32 %v725_v12  ;;  %v710_v18 = vadd.f32 %v2931_v62, %v687_v13  ;;  %v587_v19 = vmul.f32 %v2917_v54, %v546_v16 }
  0xf7   : > { %v770_v20 = vadd.f32 0.5, %v754_v17 }
  0xf8   : > { %v2437_v21 = vpop.eup %2436  ;;  %v726_v22 = vmul.f32 0.5, %v710_v18  ;;  %v688_v23 = vadd.f32 %v672_v15, %v587_v19  ;;  %v640_v24 = vpop.permute.xlu0 %639 }
  0xf9   : > { %v673_v25 = vmul.f32 %v2922_v55, %v640_v24  ;;  %v551_v26 = vpop.permute.xlu1 %550  ;;  %2073 = vmatmul.mubr.f32.gmra.mrb[4].mxu0 %v770_v20  ;;  %v755_v27 = vmul.f32 0.5, %v2437_v21 }
  0xfa   : > { %2442 = vtanh.f32 %v726_v22  ;;  %v711_v28 = vadd.f32 %v2931_v62, %v688_v23  ;;  %v588_v29 = vmul.f32 %v2917_v54, %v551_v26 }
  0xfb   : > { %v771_v30 = vadd.f32 0.5, %v755_v27  ;;  %v1020_v27 = vld [vmem:[%s3159_s5 + $0x38] sm:$0xff] }
  0xfc   : > { %v2439_v31 = vpop.eup %2438  ;;  %v727_v32 = vmul.f32 0.5, %v711_v28  ;;  %v689_v33 = vadd.f32 %v673_v25, %v588_v29  ;;  %v644_v34 = vpop.permute.xlu0 %643  ;;  %v1021_v29 = vld [vmem:[%s3159_s5 + $0x40] sm:$0xff] }
  0xfd   : > { %v674_v35 = vmul.f32 %v2922_v55, %v644_v34  ;;  %v556_v36 = vpop.permute.xlu1 %555  ;;  %2075 = vmatprep.mubr.f32.mxu0 %v771_v30  ;;  %v756_v37 = vmul.f32 0.5, %v2439_v31  ;;  %v1022_v30 = vld [vmem:[%s3159_s5 + $0x48] sm:$0xff] }
  0xfe   : > { %2444 = vtanh.f32 %v727_v32  ;;  %v712_v38 = vadd.f32 %v2931_v62, %v689_v33  ;;  %v589_v39 = vmul.f32 %v2917_v54, %v556_v36  ;;  %v2306_v31 = vpack.c.bf16 %v1022_v30, %v1021_v29  ;;  %v1023_v32 = vld [vmem:[%s3159_s5 + $0x50] sm:$0xff]  ;;  %v1024_v33 = vld [vmem:[%s3159_s5 + $0x58] sm:$0xff]  ;;  %v1026_v36 = vld [vmem:[%s3159_s5 + $0x68] sm:$0xff] }
  0xff   : > { %v772_v40 = vadd.f32 0.5, %v756_v37  ;;  %v2310_v34 = vpack.c.bf16 %v1024_v33, %v1023_v32 }
 0x100   : > { %v2441_v41 = vpop.eup %2440  ;;  %v728_v42 = vmul.f32 0.5, %v712_v38  ;;  %v690_v43 = vadd.f32 %v674_v35, %v589_v39  ;;  %v648_v44 = vpop.permute.xlu0 %647  ;;  %v1025_v35 = vld [vmem:[%s3159_s5 + $0x60] sm:$0xff]  ;;  %v1027_v38 = vld [vmem:[%s3159_s5 + $0x70] sm:$0xff]  ;;  %v1028_v39 = vld [vmem:[%s3159_s5 + $0x78] sm:$0xff] }
 0x101   : > { %v675_v45 = vmul.f32 %v2922_v55, %v648_v44  ;;  %v561_v46 = vpop.permute.xlu1 %560  ;;  %2076 = vmatmul.mubr.f32.gmra.mrb[6].mxu0 %v772_v40  ;;  %v757_v47 = vmul.f32 0.5, %v2441_v41  ;;  %v2314_v37 = vpack.c.bf16 %v1026_v36, %v1025_v35  ;;  %v2318_v40 = vpack.c.bf16 %v1028_v39, %v1027_v38  ;;  %v1245_v41 = vld [vmem:[#allocation3] sm:$0xff] }
 0x102   : > { %2446 = vtanh.f32 %v728_v42  ;;  %v713_v48 = vadd.f32 %v2931_v62, %v690_v43  ;;  %v590_v49 = vmul.f32 %v2917_v54, %v561_v46  ;;  %v1246_v42 = vld [vmem:[#allocation3 + $0x8] sm:$0xff]  ;;  %v1247_v43 = vld [vmem:[#allocation3 + $0x10] sm:$0xff] }
 0x103   : > { %v773_v50 = vadd.f32 0.5, %v757_v47  ;;  %v2322_v44 = vpack.c.bf16 %v1246_v42, %v1245_v41  ;;  %v1249_v47 = vld [vmem:[#allocation3 + $0x20] sm:$0xff] }
 0x104   : > { %v2443_v51 = vpop.eup %2442  ;;  %v729_v52 = vmul.f32 0.5, %v713_v48  ;;  %v691_v53 = vadd.f32 %v675_v45, %v590_v49  ;;  %v652_v56 = vpop.permute.xlu0 %651  ;;  %v1248_v45 = vld [vmem:[#allocation3 + $0x18] sm:$0xff]  ;;  %v1250_v48 = vld [vmem:[#allocation3 + $0x28] sm:$0xff] }
 0x105   : > { %v676_v57 = vmul.f32 %v2922_v55, %v652_v56  ;;  %v566_v58 = vpop.permute.xlu1 %565  ;;  %2078 = vmatprep.mubr.f32.mxu0 %v773_v50  ;;  %v758_v59 = vmul.f32 0.5, %v2443_v51  ;;  %v2326_v46 = vpack.c.bf16 %v1248_v45, %v1247_v43  ;;  %2323 = vmatprep.subr.bf16.mxu0 %v2322_v44  ;;  %v2330_v49 = vpack.c.bf16 %v1250_v48, %v1249_v47  ;;  %v3010_v50 = vld [vmem:[%s3158_s4] ss:$0 sm:$0xff] }
 0x106   : > { %2448 = vtanh.f32 %v729_v52  ;;  %v714_v60 = vadd.f32 %v2931_v62, %v691_v53  ;;  %v591_v61 = vmul.f32 %v2917_v54, %v566_v58  ;;  %2325 = vmatpush3.bf16.msra.mxu0 %v2322_v44 }
 0x107   : > { %v774_v63 = vadd.f32 0.5, %v758_v59  ;;  %2327 = vmatprep.subr.bf16.mxu0 %v2326_v46 }
 0x108   : > { %v2445_v0 = vpop.eup %2444  ;;  %v730_v1 = vmul.f32 0.5, %v714_v60  ;;  %v692_v2 = vadd.f32 %v676_v57, %v591_v61  ;;  %v656_v3 = vpop.permute.xlu0 %655 }
 0x109   : > { %v677_v4 = vmul.f32 %v2922_v55, %v656_v3  ;;  %v571_v5 = vpop.permute.xlu1 %570  ;;  %2079 = vmatmul.mubr.f32.gmra.mrb[8].mxu0 %v774_v63  ;;  %v759_v6 = vmul.f32 0.5, %v2445_v0 }
 0x10a   : > { %2450 = vtanh.f32 %v730_v1  ;;  %v715_v7 = vadd.f32 %v2931_v62, %v692_v2  ;;  %v592_v8 = vmul.f32 %v2917_v54, %v571_v5  ;;  %2329 = vmatpush3.bf16.msra.mxu0 %v2326_v46 }
 0x10b   : > { %v775_v9 = vadd.f32 0.5, %v759_v6  ;;  %2331 = vmatprep.subr.bf16.mxu0 %v2330_v49 }
 0x10c   : > { %v2447_v10 = vpop.eup %2446  ;;  %v731_v11 = vmul.f32 0.5, %v715_v7  ;;  %v693_v12 = vadd.f32 %v677_v4, %v592_v8 }
 0x10d   : > { %2081 = vmatprep.mubr.f32.mxu0 %v775_v9  ;;  %v760_v13 = vmul.f32 0.5, %v2447_v10 }
 0x10e   : > { %2452 = vtanh.f32 %v731_v11  ;;  %v716_v14 = vadd.f32 %v2931_v62, %v693_v12  ;;  %v1019_v62 = vld [vmem:[%s3159_s5 + $0x30] sm:$0xff]  ;;  %2333 = vmatpush3.bf16.msra.mxu0 %v2330_v49 }
 0x10f   : > { %v776_v15 = vadd.f32 0.5, %v760_v13  ;;  %v2302_v28 = vpack.c.bf16 %v1020_v27, %v1019_v62 }
 0x110   : > { %v2449_v16 = vpop.eup %2448  ;;  %v732_v55 = vmul.f32 0.5, %v716_v14 }
 0x111   : > { %2082 = vmatmul.mubr.f32.gmra.mrb[10].mxu0 %v776_v15  ;;  %v761_v17 = vmul.f32 0.5, %v2449_v16  ;;  %2303 = vmatprep.subr.bf16.mxu1 %v2302_v28 }
 0x112   : > { %2454 = vtanh.f32 %v732_v55  ;;  %2305 = vmatpush3.bf16.msra.mxu1 %v2302_v28 }
 0x113   : > { %v777_v18 = vadd.f32 0.5, %v761_v17  ;;  %2307 = vmatprep.subr.bf16.mxu1 %v2306_v31 }
 0x114   : > { %v2451_v19 = vpop.eup %2450 }
 0x115   : > { %2084 = vmatprep.mubr.f32.mxu0 %v777_v18  ;;  %v762_v20 = vmul.f32 0.5, %v2451_v19 }
 0x116   : > { %2309 = vmatpush3.bf16.msra.mxu1 %v2306_v31 }
 0x117   : > { %v778_v54 = vadd.f32 0.5, %v762_v20  ;;  %2311 = vmatprep.subr.bf16.mxu1 %v2310_v34 }
 0x118   : > { %v2453_v21 = vpop.eup %2452 }
 0x119   : > { %2085 = vmatmul.mubr.f32.gmra.mrb[12].mxu0 %v778_v54  ;;  %v763_v22 = vmul.f32 0.5, %v2453_v21 }
 0x11a   : > { %2313 = vmatpush3.bf16.msra.mxu1 %v2310_v34 }
 0x11b   : > { %v779_v23 = vadd.f32 0.5, %v763_v22  ;;  %2315 = vmatprep.subr.bf16.mxu1 %v2314_v37 }
 0x11c   : > { %v2455_v24 = vpop.eup %2454 }
 0x11d   : > { %2087 = vmatprep.mubr.f32.mxu0 %v779_v23  ;;  %v764_v25 = vmul.f32 0.5, %v2455_v24 }
 0x11e   : > { %2317 = vmatpush3.bf16.msra.mxu1 %v2314_v37 }
 0x11f   : > { %v780_v26 = vadd.f32 0.5, %v764_v25  ;;  %2319 = vmatprep.subr.bf16.mxu1 %v2318_v40 }
 0x121   : > { %2088 = vmatmul.mubr.f32.gmra.mrb[14].mxu0 %v780_v26 }
 0x122   : > { %2321 = vmatpush3.bf16.msra.mxu1 %v2318_v40 }
 0x1bd   : > { %v2068_v51 = vpop.f32.mrb[0].mxu0 }
 0x1be   : > { %v876_v52 = vadd.f32 %v2068_v51, %v3010_v50  ;;  %v870_v53 = vpop.f32.mrb[1].mxu0 }
 0x1bf   : > { %v871_v56 = vadd.f32 %v3010_v50, %v870_v53 }
 0x1c0   : > { %v950_v57 = vmul.f32 0.5, %v876_v52 }
 0x1c1   : > { %v949_v58 = vmul.f32 0.5, %v871_v56 }
 0x1c2   : > { %2456 = vtanh.f32 %v950_v57 }
 0x1c3   : > { %2458 = vtanh.f32 %v949_v58 }
 0x1c4   : > { %v2071_v59 = vpop.f32.mrb[2].mxu0 }
 0x1c5   : > { %v886_v60 = vadd.f32 %v2071_v59, %v3010_v50  ;;  %v880_v61 = vpop.f32.mrb[3].mxu0 }
 0x1c6   : > { %v881_v63 = vadd.f32 %v3010_v50, %v880_v61 }
 0x1c7   : > { %v952_v0 = vmul.f32 0.5, %v886_v60 }
 0x1c8   : > { %v951_v1 = vmul.f32 0.5, %v881_v63 }
 0x1c9   : > { %2460 = vtanh.f32 %v952_v0 }
 0x1ca   : > { %2462 = vtanh.f32 %v951_v1 }
 0x1cc   : > { %v2457_v2 = vpop.eup %2456  ;;  %v2074_v3 = vpop.f32.mrb[4].mxu0 }
 0x1cd   : > { %v2459_v4 = vpop.eup %2458  ;;  %v982_v5 = vmul.f32 0.5, %v2457_v2  ;;  %v896_v6 = vadd.f32 %v2074_v3, %v3010_v50  ;;  %v890_v7 = vpop.f32.mrb[5].mxu0 }
 0x1ce   : > { %v891_v8 = vadd.f32 %v3010_v50, %v890_v7  ;;  %v981_v9 = vmul.f32 0.5, %v2459_v4 }
 0x1cf   : > { %v954_v10 = vmul.f32 0.5, %v896_v6  ;;  %v998_v13 = vadd.f32 0.5, %v982_v5 }
 0x1d0   : > { %v953_v11 = vmul.f32 0.5, %v891_v8  ;;  %v997_v12 = vadd.f32 0.5, %v981_v9 }
 0x1d1   : > { %2464 = vtanh.f32 %v954_v10 }
 0x1d2   : > { %2466 = vtanh.f32 %v953_v11  ;;  %2122 = vmatprep.mubr.f32.mxu1 %v997_v12 }
 0x1d3   : > { %v2461_v14 = vpop.eup %2460  ;;  %2123 = vmatmul.mubr.f32.vlgmr.msra.gmra.mrb[0].mxu1 %v998_v13 }
 0x1d4   : > { %v2463_v15 = vpop.eup %2462  ;;  %v984_v16 = vmul.f32 0.5, %v2461_v14  ;;  %v2077_v55 = vpop.f32.mrb[6].mxu0 }
 0x1d5   : > { %v983_v17 = vmul.f32 0.5, %v2463_v15  ;;  %v906_v18 = vadd.f32 %v2077_v55, %v3010_v50  ;;  %v900_v19 = vpop.f32.mrb[7].mxu0 }
 0x1d6   : > { %v901_v20 = vadd.f32 %v3010_v50, %v900_v19  ;;  %v1000_v23 = vadd.f32 0.5, %v984_v16 }
 0x1d7   : > { %v956_v54 = vmul.f32 0.5, %v906_v18  ;;  %v999_v21 = vadd.f32 0.5, %v983_v17 }
 0x1d8   : > { %v955_v22 = vmul.f32 0.5, %v901_v20 }
 0x1d9   : > { %2468 = vtanh.f32 %v956_v54  ;;  %2125 = vmatprep.mubr.f32.mxu1 %v999_v21  ;;  %v1251_v54 = vld [vmem:[#allocation3 + $0x30] sm:$0xff]  ;;  %v1252_v21 = vld [vmem:[#allocation3 + $0x38] sm:$0xff] }
 0x1da   : > { %2470 = vtanh.f32 %v955_v22  ;;  %2126 = vmatmul.mubr.f32.gmra.mrb[2].mxu1 %v1000_v23  ;;  %v2334_v22 = vpack.c.bf16 %v1252_v21, %v1251_v54  ;;  %v1253_v23 = vld [vmem:[#allocation3 + $0x40] sm:$0xff] }
 0x1db   : > { %v2465_v24 = vpop.eup %2464 }
 0x1dc   : > { %v2467_v25 = vpop.eup %2466  ;;  %v986_v26 = vmul.f32 0.5, %v2465_v24  ;;  %v2080_v62 = vpop.f32.mrb[8].mxu0  ;;  %2335 = vmatprep.subr.bf16.mxu0 %v2334_v22  ;;  %v1254_v24 = vld [vmem:[#allocation3 + $0x48] sm:$0xff] }
 0x1dd   : > { %v985_v27 = vmul.f32 0.5, %v2467_v25  ;;  %v916_v28 = vadd.f32 %v2080_v62, %v3010_v50  ;;  %v910_v29 = vpop.f32.mrb[9].mxu0  ;;  %2337 = vmatpush3.bf16.msra.mxu0 %v2334_v22  ;;  %v2338_v25 = vpack.c.bf16 %v1254_v24, %v1253_v23  ;;  %v1256_v62 = vld [vmem:[#allocation3 + $0x58] sm:$0xff] }
 0x1de   : > { %v911_v30 = vadd.f32 %v3010_v50, %v910_v29  ;;  %v1002_v34 = vadd.f32 0.5, %v986_v26  ;;  %v1255_v26 = vld [vmem:[#allocation3 + $0x50] sm:$0xff]  ;;  %v1258_v29 = vld [vmem:[#allocation3 + $0x68] sm:$0xff] }
 0x1df   : > { %v958_v31 = vmul.f32 0.5, %v916_v28  ;;  %v1001_v32 = vadd.f32 0.5, %v985_v27  ;;  %2339 = vmatprep.subr.bf16.mxu0 %v2338_v25  ;;  %v2342_v27 = vpack.c.bf16 %v1256_v62, %v1255_v26  ;;  %v1257_v28 = vld [vmem:[#allocation3 + $0x60] sm:$0xff] }
 0x1e0   : > { %v957_v33 = vmul.f32 0.5, %v911_v30  ;;  %v2346_v30 = vpack.c.bf16 %v1258_v29, %v1257_v28 }
 0x1e1   : > { %2472 = vtanh.f32 %v958_v31  ;;  %2128 = vmatprep.mubr.f32.mxu1 %v1001_v32  ;;  %2341 = vmatpush3.bf16.msra.mxu0 %v2338_v25  ;;  %v1259_v31 = vld [vmem:[#allocation3 + $0x70] sm:$0xff]  ;;  %v1260_v32 = vld [vmem:[#allocation3 + $0x78] sm:$0xff] }
 0x1e2   : > { %2474 = vtanh.f32 %v957_v33  ;;  %2129 = vmatmul.mubr.f32.gmra.mrb[4].mxu1 %v1002_v34  ;;  %2343 = vmatprep.subr.bf16.mxu0 %v2342_v27  ;;  %v2350_v33 = vpack.c.bf16 %v1260_v32, %v1259_v31  ;;  %v1477_v34 = vld [vmem:[#allocation5] sm:$0xff] }
 0x1e3   : > { %v2469_v35 = vpop.eup %2468 }
 0x1e4   : > { %v2471_v36 = vpop.eup %2470  ;;  %v988_v37 = vmul.f32 0.5, %v2469_v35  ;;  %v2083_v38 = vpop.f32.mrb[10].mxu0  ;;  %v1478_v35 = vld [vmem:[#allocation5 + $0x8] sm:$0xff] }
 0x1e5   : > { %v987_v39 = vmul.f32 0.5, %v2471_v36  ;;  %v926_v40 = vadd.f32 %v2083_v38, %v3010_v50  ;;  %v920_v41 = vpop.f32.mrb[11].mxu0  ;;  %2345 = vmatpush3.bf16.msra.mxu0 %v2342_v27  ;;  %v1479_v36 = vld [vmem:[#allocation5 + $0x10] sm:$0xff]  ;;  %v1480_v38 = vld [vmem:[#allocation5 + $0x18] sm:$0xff] }
 0x1e6   : > { %v921_v42 = vadd.f32 %v3010_v50, %v920_v41  ;;  %v1004_v46 = vadd.f32 0.5, %v988_v37  ;;  %2347 = vmatprep.subr.bf16.mxu0 %v2346_v30  ;;  %v2354_v37 = vpack.c.bf16 %v1478_v35, %v1477_v34  ;;  %v1482_v41 = vld [vmem:[#allocation5 + $0x28] sm:$0xff] }
 0x1e7   : > { %v960_v43 = vmul.f32 0.5, %v926_v40  ;;  %v1003_v44 = vadd.f32 0.5, %v987_v39  ;;  %v2358_v39 = vpack.c.bf16 %v1480_v38, %v1479_v36  ;;  %v1481_v40 = vld [vmem:[#allocation5 + $0x20] sm:$0xff] }
 0x1e8   : > { %v959_v45 = vmul.f32 0.5, %v921_v42  ;;  %2355 = vmatprep.subr.bf16.mxu1 %v2354_v37  ;;  %v2362_v42 = vpack.c.bf16 %v1482_v41, %v1481_v40 }
 0x1e9   : > { %2476 = vtanh.f32 %v960_v43  ;;  %2131 = vmatprep.mubr.f32.mxu1 %v1003_v44  ;;  %2349 = vmatpush3.bf16.msra.mxu0 %v2346_v30  ;;  %v3031_v43 = vld [vmem:[%s3160_s6] ss:$0 sm:$0xff] }
 0x1ea   : > { %2478 = vtanh.f32 %v959_v45  ;;  %2132 = vmatmul.mubr.f32.gmra.mrb[6].mxu1 %v1004_v46  ;;  %2351 = vmatprep.subr.bf16.mxu0 %v2350_v33 }
 0x1eb   : > { %v2473_v47 = vpop.eup %2472  ;;  %2357 = vmatpush3.bf16.msra.mxu1 %v2354_v37 }
 0x1ec   : > { %v2475_v48 = vpop.eup %2474  ;;  %v990_v49 = vmul.f32 0.5, %v2473_v47  ;;  %v2086_v51 = vpop.f32.mrb[12].mxu0  ;;  %2359 = vmatprep.subr.bf16.mxu1 %v2358_v39 }
 0x1ed   : > { %v989_v52 = vmul.f32 0.5, %v2475_v48  ;;  %v936_v53 = vadd.f32 %v2086_v51, %v3010_v50  ;;  %v930_v56 = vpop.f32.mrb[13].mxu0  ;;  %2353 = vmatpush3.bf16.msra.mxu0 %v2350_v33 }
 0x1ee   : > { %v931_v57 = vadd.f32 %v3010_v50, %v930_v56  ;;  %v1006_v61 = vadd.f32 0.5, %v990_v49 }
 0x1ef   : > { %v962_v58 = vmul.f32 0.5, %v936_v53  ;;  %v1005_v59 = vadd.f32 0.5, %v989_v52  ;;  %2361 = vmatpush3.bf16.msra.mxu1 %v2358_v39 }
 0x1f0   : > { %v961_v60 = vmul.f32 0.5, %v931_v57  ;;  %2363 = vmatprep.subr.bf16.mxu1 %v2362_v42 }
 0x1f1   : > { %2480 = vtanh.f32 %v962_v58  ;;  %2134 = vmatprep.mubr.f32.mxu1 %v1005_v59 }
 0x1f2   : > { %2482 = vtanh.f32 %v961_v60  ;;  %2135 = vmatmul.mubr.f32.gmra.mrb[8].mxu1 %v1006_v61 }
 0x1f3   : > { %v2477_v63 = vpop.eup %2476  ;;  %2365 = vmatpush3.bf16.msra.mxu1 %v2362_v42 }
 0x1f4   : > { %v2479_v0 = vpop.eup %2478  ;;  %v992_v1 = vmul.f32 0.5, %v2477_v63  ;;  %v2089_v2 = vpop.f32.mrb[14].mxu0 }
 0x1f5   : > { %v991_v3 = vmul.f32 0.5, %v2479_v0  ;;  %v946_v4 = vadd.f32 %v2089_v2, %v3010_v50  ;;  %v940_v5 = vpop.f32.mrb[15].mxu0 }
 0x1f6   : > { %v941_v6 = vadd.f32 %v3010_v50, %v940_v5  ;;  %v1008_v10 = vadd.f32 0.5, %v992_v1 }
 0x1f7   : > { %v964_v7 = vmul.f32 0.5, %v946_v4  ;;  %v1007_v8 = vadd.f32 0.5, %v991_v3 }
 0x1f8   : > { %v963_v9 = vmul.f32 0.5, %v941_v6 }
 0x1f9   : > { %2484 = vtanh.f32 %v964_v7  ;;  %2137 = vmatprep.mubr.f32.mxu1 %v1007_v8 }
 0x1fa   : > { %2486 = vtanh.f32 %v963_v9  ;;  %2138 = vmatmul.mubr.f32.gmra.mrb[10].mxu1 %v1008_v10 }
 0x1fb   : > { %v2481_v11 = vpop.eup %2480 }
 0x1fc   : > { %v2483_v12 = vpop.eup %2482  ;;  %v994_v13 = vmul.f32 0.5, %v2481_v11 }
 0x1fd   : > { %v993_v14 = vmul.f32 0.5, %v2483_v12 }
 0x1fe   : > { %v1010_v16 = vadd.f32 0.5, %v994_v13 }
 0x1ff   : > { %v1009_v15 = vadd.f32 0.5, %v993_v14 }
 0x201   : > { %2140 = vmatprep.mubr.f32.mxu1 %v1009_v15 }
 0x202   : > { %2141 = vmatmul.mubr.f32.gmra.mrb[12].mxu1 %v1010_v16 }
 0x203   : > { %v2485_v55 = vpop.eup %2484 }
 0x204   : > { %v2487_v17 = vpop.eup %2486  ;;  %v996_v18 = vmul.f32 0.5, %v2485_v55 }
 0x205   : > { %v995_v50 = vmul.f32 0.5, %v2487_v17 }
 0x206   : > { %v1012_v20 = vadd.f32 0.5, %v996_v18 }
 0x207   : > { %v1011_v19 = vadd.f32 0.5, %v995_v50 }
 0x209   : > { %2143 = vmatprep.mubr.f32.mxu1 %v1011_v19 }
 0x20a   : > { %2144 = vmatmul.mubr.f32.gmra.mrb[14].mxu1 %v1012_v20 }
 0x2a6   : > { %v2124_v44 = vpop.f32.mrb[0].mxu1 }
 0x2a7   : > { %v1108_v45 = vadd.f32 %v2124_v44, %v3031_v43  ;;  %v1102_v46 = vpop.f32.mrb[1].mxu1 }
 0x2a8   : > { %v1103_v47 = vadd.f32 %v3031_v43, %v1102_v46 }
 0x2a9   : > { %v1182_v48 = vmul.f32 0.5, %v1108_v45 }
 0x2aa   : > { %v1181_v49 = vmul.f32 0.5, %v1103_v47 }
 0x2ab   : > { %2488 = vtanh.f32 %v1182_v48 }
 0x2ac   : > { %2490 = vtanh.f32 %v1181_v49 }
 0x2ad   : > { %v2127_v51 = vpop.f32.mrb[2].mxu1 }
 0x2ae   : > { %v1118_v52 = vadd.f32 %v2127_v51, %v3031_v43  ;;  %v1112_v53 = vpop.f32.mrb[3].mxu1 }
 0x2af   : > { %v1113_v56 = vadd.f32 %v3031_v43, %v1112_v53 }
 0x2b0   : > { %v1184_v57 = vmul.f32 0.5, %v1118_v52 }
 0x2b1   : > { %v1183_v58 = vmul.f32 0.5, %v1113_v56 }
 0x2b2   : > { %2492 = vtanh.f32 %v1184_v57 }
 0x2b3   : > { %2494 = vtanh.f32 %v1183_v58 }
 0x2b5   : > { %v2489_v59 = vpop.eup %2488  ;;  %v2130_v60 = vpop.f32.mrb[4].mxu1 }
 0x2b6   : > { %v2491_v61 = vpop.eup %2490  ;;  %v1214_v63 = vmul.f32 0.5, %v2489_v59  ;;  %v1128_v0 = vadd.f32 %v2130_v60, %v3031_v43  ;;  %v1122_v1 = vpop.f32.mrb[5].mxu1 }
 0x2b7   : > { %v1213_v2 = vmul.f32 0.5, %v2491_v61  ;;  %v1123_v3 = vadd.f32 %v3031_v43, %v1122_v1 }
 0x2b8   : > { %v1186_v4 = vmul.f32 0.5, %v1128_v0  ;;  %v1230_v7 = vadd.f32 0.5, %v1214_v63 }
 0x2b9   : > { %v1185_v5 = vmul.f32 0.5, %v1123_v3  ;;  %v1229_v6 = vadd.f32 0.5, %v1213_v2 }
 0x2ba   : > { %2496 = vtanh.f32 %v1186_v4 }
 0x2bb   : > { %2498 = vtanh.f32 %v1185_v5  ;;  %2178 = vmatprep.mubr.f32.mxu0 %v1229_v6 }
 0x2bc   : > { %v2493_v8 = vpop.eup %2492  ;;  %2179 = vmatmul.mubr.f32.vlgmr.msra.gmra.mrb[16].mxu0 %v1230_v7 }
 0x2bd   : > { %v2495_v9 = vpop.eup %2494  ;;  %v1216_v10 = vmul.f32 0.5, %v2493_v8  ;;  %v2133_v11 = vpop.f32.mrb[6].mxu1 }
 0x2be   : > { %v1215_v12 = vmul.f32 0.5, %v2495_v9  ;;  %v1138_v13 = vadd.f32 %v2133_v11, %v3031_v43  ;;  %v1132_v14 = vpop.f32.mrb[7].mxu1 }
 0x2bf   : > { %v1133_v15 = vadd.f32 %v3031_v43, %v1132_v14  ;;  %v1232_v18 = vadd.f32 0.5, %v1216_v10 }
 0x2c0   : > { %v1188_v16 = vmul.f32 0.5, %v1138_v13  ;;  %v1231_v55 = vadd.f32 0.5, %v1215_v12 }
 0x2c1   : > { %v1187_v17 = vmul.f32 0.5, %v1133_v15 }
 0x2c2   : > { %2500 = vtanh.f32 %v1188_v16  ;;  %2181 = vmatprep.mubr.f32.mxu0 %v1231_v55  ;;  %v1483_v16 = vld [vmem:[#allocation5 + $0x30] sm:$0xff]  ;;  %v1484_v55 = vld [vmem:[#allocation5 + $0x38] sm:$0xff] }
 0x2c3   : > { %2502 = vtanh.f32 %v1187_v17  ;;  %2182 = vmatmul.mubr.f32.gmra.mrb[18].mxu0 %v1232_v18  ;;  %v2366_v17 = vpack.c.bf16 %v1484_v55, %v1483_v16  ;;  %v1485_v18 = vld [vmem:[#allocation5 + $0x40] sm:$0xff] }
 0x2c4   : > { %v2497_v50 = vpop.eup %2496 }
 0x2c5   : > { %v2499_v19 = vpop.eup %2498  ;;  %v1218_v20 = vmul.f32 0.5, %v2497_v50  ;;  %v2136_v54 = vpop.f32.mrb[8].mxu1  ;;  %2367 = vmatprep.subr.bf16.mxu1 %v2366_v17  ;;  %v1486_v50 = vld [vmem:[#allocation5 + $0x48] sm:$0xff] }
 0x2c6   : > { %v1217_v21 = vmul.f32 0.5, %v2499_v19  ;;  %v1148_v22 = vadd.f32 %v2136_v54, %v3031_v43  ;;  %v1142_v23 = vpop.f32.mrb[9].mxu1  ;;  %2369 = vmatpush3.bf16.msra.mxu1 %v2366_v17  ;;  %v2370_v19 = vpack.c.bf16 %v1486_v50, %v1485_v18  ;;  %v1488_v54 = vld [vmem:[#allocation5 + $0x58] sm:$0xff] }
 0x2c7   : > { %v1143_v24 = vadd.f32 %v3031_v43, %v1142_v23  ;;  %v1234_v27 = vadd.f32 0.5, %v1218_v20  ;;  %v1487_v20 = vld [vmem:[#allocation5 + $0x50] sm:$0xff]  ;;  %v1490_v23 = vld [vmem:[#allocation5 + $0x68] sm:$0xff] }
 0x2c8   : > { %v1190_v25 = vmul.f32 0.5, %v1148_v22  ;;  %v1233_v26 = vadd.f32 0.5, %v1217_v21  ;;  %2371 = vmatprep.subr.bf16.mxu1 %v2370_v19  ;;  %v2374_v21 = vpack.c.bf16 %v1488_v54, %v1487_v20  ;;  %v1489_v22 = vld [vmem:[#allocation5 + $0x60] sm:$0xff] }
 0x2c9   : > { %v1189_v62 = vmul.f32 0.5, %v1143_v24  ;;  %v2378_v24 = vpack.c.bf16 %v1490_v23, %v1489_v22 }
 0x2ca   : > { %2504 = vtanh.f32 %v1190_v25  ;;  %2184 = vmatprep.mubr.f32.mxu0 %v1233_v26  ;;  %2373 = vmatpush3.bf16.msra.mxu1 %v2370_v19  ;;  %v1491_v25 = vld [vmem:[#allocation5 + $0x70] sm:$0xff]  ;;  %v1492_v26 = vld [vmem:[#allocation5 + $0x78] sm:$0xff] }
 0x2cb   : > { %2506 = vtanh.f32 %v1189_v62  ;;  %2185 = vmatmul.mubr.f32.gmra.mrb[20].mxu0 %v1234_v27  ;;  %2375 = vmatprep.subr.bf16.mxu1 %v2374_v21  ;;  %v2382_v62 = vpack.c.bf16 %v1492_v26, %v1491_v25  ;;  %v3052_v27 = vld [vmem:[%s3162_s8] ss:$0 sm:$0xff] }
 0x2cc   : > { %v2501_v28 = vpop.eup %2500 }
 0x2cd   : > { %v2503_v29 = vpop.eup %2502  ;;  %v1220_v30 = vmul.f32 0.5, %v2501_v28  ;;  %v2139_v31 = vpop.f32.mrb[10].mxu1 }
 0x2ce   : > { %v1219_v32 = vmul.f32 0.5, %v2503_v29  ;;  %v1158_v33 = vadd.f32 %v2139_v31, %v3031_v43  ;;  %v1152_v34 = vpop.f32.mrb[11].mxu1  ;;  %2377 = vmatpush3.bf16.msra.mxu1 %v2374_v21 }
 0x2cf   : > { %v1153_v35 = vadd.f32 %v3031_v43, %v1152_v34  ;;  %v1236_v39 = vadd.f32 0.5, %v1220_v30  ;;  %2379 = vmatprep.subr.bf16.mxu1 %v2378_v24 }
 0x2d0   : > { %v1192_v36 = vmul.f32 0.5, %v1158_v33  ;;  %v1235_v37 = vadd.f32 0.5, %v1219_v32 }
 0x2d1   : > { %v1191_v38 = vmul.f32 0.5, %v1153_v35 }
 0x2d2   : > { %2508 = vtanh.f32 %v1192_v36  ;;  %2187 = vmatprep.mubr.f32.mxu0 %v1235_v37  ;;  %2381 = vmatpush3.bf16.msra.mxu1 %v2378_v24 }
 0x2d3   : > { %2510 = vtanh.f32 %v1191_v38  ;;  %2188 = vmatmul.mubr.f32.gmra.mrb[22].mxu0 %v1236_v39  ;;  %2383 = vmatprep.subr.bf16.mxu1 %v2382_v62 }
 0x2d4   : > { %v2505_v40 = vpop.eup %2504 }
 0x2d5   : > { %v2507_v41 = vpop.eup %2506  ;;  %v1222_v42 = vmul.f32 0.5, %v2505_v40  ;;  %v2142_v44 = vpop.f32.mrb[12].mxu1 }
 0x2d6   : > { %v1221_v45 = vmul.f32 0.5, %v2507_v41  ;;  %v1168_v46 = vadd.f32 %v2142_v44, %v3031_v43  ;;  %v1162_v47 = vpop.f32.mrb[13].mxu1  ;;  %2385 = vmatpush3.bf16.msra.mxu1 %v2382_v62 }
 0x2d7   : > { %v1163_v48 = vadd.f32 %v3031_v43, %v1162_v47  ;;  %v1238_v53 = vadd.f32 0.5, %v1222_v42 }
 0x2d8   : > { %v1194_v49 = vmul.f32 0.5, %v1168_v46  ;;  %v1237_v51 = vadd.f32 0.5, %v1221_v45 }
 0x2d9   : > { %v1193_v52 = vmul.f32 0.5, %v1163_v48 }
 0x2da   : > { %2512 = vtanh.f32 %v1194_v49  ;;  %2190 = vmatprep.mubr.f32.mxu0 %v1237_v51 }
 0x2db   : > { %2514 = vtanh.f32 %v1193_v52  ;;  %2191 = vmatmul.mubr.f32.gmra.mrb[24].mxu0 %v1238_v53 }
 0x2dc   : > { %v2509_v56 = vpop.eup %2508 }
 0x2dd   : > { %v2511_v57 = vpop.eup %2510  ;;  %v1224_v58 = vmul.f32 0.5, %v2509_v56  ;;  %v2145_v59 = vpop.f32.mrb[14].mxu1 }
 0x2de   : > { %v1223_v60 = vmul.f32 0.5, %v2511_v57  ;;  %v1178_v61 = vadd.f32 %v2145_v59, %v3031_v43  ;;  %v1172_v63 = vpop.f32.mrb[15].mxu1 }
 0x2df   : > { %v1173_v0 = vadd.f32 %v3031_v43, %v1172_v63  ;;  %v1240_v4 = vadd.f32 0.5, %v1224_v58 }
 0x2e0   : > { %v1196_v1 = vmul.f32 0.5, %v1178_v61  ;;  %v1239_v2 = vadd.f32 0.5, %v1223_v60 }
 0x2e1   : > { %v1195_v3 = vmul.f32 0.5, %v1173_v0 }
 0x2e2   : > { %2516 = vtanh.f32 %v1196_v1  ;;  %2193 = vmatprep.mubr.f32.mxu0 %v1239_v2 }
 0x2e3   : > { %2518 = vtanh.f32 %v1195_v3  ;;  %2194 = vmatmul.mubr.f32.gmra.mrb[26].mxu0 %v1240_v4 }
 0x2e4   : > { %v2513_v5 = vpop.eup %2512 }
 0x2e5   : > { %v2515_v6 = vpop.eup %2514  ;;  %v1226_v7 = vmul.f32 0.5, %v2513_v5 }
 0x2e6   : > { %v1225_v8 = vmul.f32 0.5, %v2515_v6 }
 0x2e7   : > { %v1242_v10 = vadd.f32 0.5, %v1226_v7 }
 0x2e8   : > { %v1241_v9 = vadd.f32 0.5, %v1225_v8 }
 0x2ea   : > { %2196 = vmatprep.mubr.f32.mxu0 %v1241_v9 }
 0x2eb   : > { %2197 = vmatmul.mubr.f32.gmra.mrb[28].mxu0 %v1242_v10 }
 0x2ec   : > { %v2517_v11 = vpop.eup %2516 }
 0x2ed   : > { %v2519_v12 = vpop.eup %2518  ;;  %v1228_v13 = vmul.f32 0.5, %v2517_v11 }
 0x2ee   : > { %v1227_v43 = vmul.f32 0.5, %v2519_v12 }
 0x2ef   : > { %v1244_v15 = vadd.f32 0.5, %v1228_v13 }
 0x2f0   : > { %v1243_v14 = vadd.f32 0.5, %v1227_v43 }
 0x2f2   : > { %2199 = vmatprep.mubr.f32.mxu0 %v1243_v14 }
 0x2f3   : > { %2200 = vmatmul.mubr.f32.gmra.mrb[30].mxu0 %v1244_v15 }
 0x38f   : > { %v2180_v28 = vpop.f32.mrb[16].mxu0 }
 0x390   : > { %v1340_v29 = vadd.f32 %v2180_v28, %v3052_v27  ;;  %v1334_v30 = vpop.f32.mrb[17].mxu0 }
 0x391   : > { %v1335_v31 = vadd.f32 %v3052_v27, %v1334_v30 }
 0x392   : > { %v1414_v32 = vmul.f32 0.5, %v1340_v29 }
 0x393   : > { %v1413_v33 = vmul.f32 0.5, %v1335_v31 }
 0x394   : > { %2520 = vtanh.f32 %v1414_v32 }
 0x395   : > { %2522 = vtanh.f32 %v1413_v33 }
 0x396   : > { %v2183_v34 = vpop.f32.mrb[18].mxu0 }
 0x397   : > { %v1350_v35 = vadd.f32 %v2183_v34, %v3052_v27  ;;  %v1344_v36 = vpop.f32.mrb[19].mxu0 }
 0x398   : > { %v1345_v37 = vadd.f32 %v3052_v27, %v1344_v36 }
 0x399   : > { %v1416_v38 = vmul.f32 0.5, %v1350_v35 }
 0x39a   : > { %v1415_v39 = vmul.f32 0.5, %v1345_v37 }
 0x39b   : > { %2524 = vtanh.f32 %v1416_v38 }
 0x39c   : > { %2526 = vtanh.f32 %v1415_v39 }
 0x39e   : > { %v2521_v40 = vpop.eup %2520  ;;  %v2186_v41 = vpop.f32.mrb[20].mxu0 }
 0x39f   : > { %v2523_v42 = vpop.eup %2522  ;;  %v1446_v44 = vmul.f32 0.5, %v2521_v40  ;;  %v1360_v45 = vadd.f32 %v2186_v41, %v3052_v27  ;;  %v1354_v46 = vpop.f32.mrb[21].mxu0 }
 0x3a0   : > { %v1445_v47 = vmul.f32 0.5, %v2523_v42  ;;  %v1355_v48 = vadd.f32 %v3052_v27, %v1354_v46 }
 0x3a1   : > { %v1418_v49 = vmul.f32 0.5, %v1360_v45  ;;  %v1462_v53 = vadd.f32 0.5, %v1446_v44 }
 0x3a2   : > { %v1417_v51 = vmul.f32 0.5, %v1355_v48  ;;  %v1461_v52 = vadd.f32 0.5, %v1445_v47 }
 0x3a3   : > { %2528 = vtanh.f32 %v1418_v49 }
 0x3a4   : > { %2530 = vtanh.f32 %v1417_v51  ;;  %2234 = vmatprep.mubr.f32.mxu1 %v1461_v52 }
 0x3a5   : > { %v2525_v56 = vpop.eup %2524  ;;  %2235 = vmatmul.mubr.f32.vlgmr.msra.gmra.mrb[16].mxu1 %v1462_v53 }
 0x3a6   : > { %v2527_v57 = vpop.eup %2526  ;;  %v1448_v58 = vmul.f32 0.5, %v2525_v56  ;;  %v2189_v59 = vpop.f32.mrb[22].mxu0 }
 0x3a7   : > { %v1447_v60 = vmul.f32 0.5, %v2527_v57  ;;  %v1370_v61 = vadd.f32 %v2189_v59, %v3052_v27  ;;  %v1364_v63 = vpop.f32.mrb[23].mxu0 }
 0x3a8   : > { %v1365_v0 = vadd.f32 %v3052_v27, %v1364_v63  ;;  %v1464_v4 = vadd.f32 0.5, %v1448_v58 }
 0x3a9   : > { %v1420_v1 = vmul.f32 0.5, %v1370_v61  ;;  %v1463_v2 = vadd.f32 0.5, %v1447_v60 }
 0x3aa   : > { %v1419_v3 = vmul.f32 0.5, %v1365_v0 }
 0x3ab   : > { %2532 = vtanh.f32 %v1420_v1  ;;  %2237 = vmatprep.mubr.f32.mxu1 %v1463_v2  ;;  %v3073_v1 = vld [vmem:[%s3164_s10] ss:$0 sm:$0xff] }
 0x3ac   : > { %2534 = vtanh.f32 %v1419_v3  ;;  %2238 = vmatmul.mubr.f32.gmra.mrb[18].mxu1 %v1464_v4 }
 0x3ad   : > { %v2529_v5 = vpop.eup %2528 }
 0x3ae   : > { %v2531_v6 = vpop.eup %2530  ;;  %v1450_v7 = vmul.f32 0.5, %v2529_v5  ;;  %v2192_v8 = vpop.f32.mrb[24].mxu0 }
 0x3af   : > { %v1449_v9 = vmul.f32 0.5, %v2531_v6  ;;  %v1380_v10 = vadd.f32 %v2192_v8, %v3052_v27  ;;  %v1374_v11 = vpop.f32.mrb[25].mxu0 }
 0x3b0   : > { %v1375_v12 = vadd.f32 %v3052_v27, %v1374_v11  ;;  %v1466_v15 = vadd.f32 0.5, %v1450_v7 }
 0x3b1   : > { %v1422_v13 = vmul.f32 0.5, %v1380_v10  ;;  %v1465_v43 = vadd.f32 0.5, %v1449_v9 }
 0x3b2   : > { %v1421_v14 = vmul.f32 0.5, %v1375_v12 }
 0x3b3   : > { %2536 = vtanh.f32 %v1422_v13  ;;  %2240 = vmatprep.mubr.f32.mxu1 %v1465_v43 }
 0x3b4   : > { %2538 = vtanh.f32 %v1421_v14  ;;  %2241 = vmatmul.mubr.f32.gmra.mrb[20].mxu1 %v1466_v15 }
 0x3b5   : > { %v2533_v16 = vpop.eup %2532 }
 0x3b6   : > { %v2535_v55 = vpop.eup %2534  ;;  %v1452_v17 = vmul.f32 0.5, %v2533_v16  ;;  %v2195_v18 = vpop.f32.mrb[26].mxu0 }
 0x3b7   : > { %v1451_v50 = vmul.f32 0.5, %v2535_v55  ;;  %v1390_v19 = vadd.f32 %v2195_v18, %v3052_v27  ;;  %v1384_v20 = vpop.f32.mrb[27].mxu0 }
 0x3b8   : > { %v1385_v54 = vadd.f32 %v3052_v27, %v1384_v20  ;;  %v1468_v24 = vadd.f32 0.5, %v1452_v17 }
 0x3b9   : > { %v1424_v21 = vmul.f32 0.5, %v1390_v19  ;;  %v1467_v22 = vadd.f32 0.5, %v1451_v50  ;;  %v3084_v50 = vld [vmem:[%s3165_s11] ss:$0 sm:$0xff] }
 0x3ba   : > { %v1423_v23 = vmul.f32 0.5, %v1385_v54 }
 0x3bb   : > { %2540 = vtanh.f32 %v1424_v21  ;;  %2243 = vmatprep.mubr.f32.mxu1 %v1467_v22 }
 0x3bc   : > { %2542 = vtanh.f32 %v1423_v23  ;;  %2244 = vmatmul.mubr.f32.gmra.mrb[22].mxu1 %v1468_v24 }
 0x3bd   : > { %v2537_v25 = vpop.eup %2536 }
 0x3be   : > { %v2539_v26 = vpop.eup %2538  ;;  %v1454_v62 = vmul.f32 0.5, %v2537_v25  ;;  %v2198_v28 = vpop.f32.mrb[28].mxu0 }
 0x3bf   : > { %v1453_v29 = vmul.f32 0.5, %v2539_v26  ;;  %v1400_v30 = vadd.f32 %v2198_v28, %v3052_v27  ;;  %v1394_v31 = vpop.f32.mrb[29].mxu0 }
 0x3c0   : > { %v1395_v32 = vadd.f32 %v3052_v27, %v1394_v31  ;;  %v1470_v36 = vadd.f32 0.5, %v1454_v62 }
 0x3c1   : > { %v1426_v33 = vmul.f32 0.5, %v1400_v30  ;;  %v1469_v34 = vadd.f32 0.5, %v1453_v29 }
 0x3c2   : > { %v1425_v35 = vmul.f32 0.5, %v1395_v32 }
 0x3c3   : > { %2544 = vtanh.f32 %v1426_v33  ;;  %2246 = vmatprep.mubr.f32.mxu1 %v1469_v34 }
 0x3c4   : > { %2546 = vtanh.f32 %v1425_v35  ;;  %2247 = vmatmul.mubr.f32.gmra.mrb[24].mxu1 %v1470_v36 }
 0x3c5   : > { %v2541_v37 = vpop.eup %2540 }
 0x3c6   : > { %v2543_v38 = vpop.eup %2542  ;;  %v1456_v39 = vmul.f32 0.5, %v2541_v37  ;;  %v2201_v40 = vpop.f32.mrb[30].mxu0 }
 0x3c7   : > { %v1455_v41 = vmul.f32 0.5, %v2543_v38  ;;  %v1410_v42 = vadd.f32 %v2201_v40, %v3052_v27  ;;  %v1404_v44 = vpop.f32.mrb[31].mxu0 }
 0x3c8   : > { %v1405_v45 = vadd.f32 %v3052_v27, %v1404_v44  ;;  %v1472_v49 = vadd.f32 0.5, %v1456_v39 }
 0x3c9   : > { %v1428_v46 = vmul.f32 0.5, %v1410_v42  ;;  %v1471_v47 = vadd.f32 0.5, %v1455_v41 }
 0x3ca   : > { %v1427_v48 = vmul.f32 0.5, %v1405_v45 }
 0x3cb   : > { %2548 = vtanh.f32 %v1428_v46  ;;  %2249 = vmatprep.mubr.f32.mxu1 %v1471_v47 }
 0x3cc   : > { %2550 = vtanh.f32 %v1427_v48  ;;  %2250 = vmatmul.mubr.f32.gmra.mrb[26].mxu1 %v1472_v49 }
 0x3cd   : > { %v2545_v51 = vpop.eup %2544 }
 0x3ce   : > { %v2547_v52 = vpop.eup %2546  ;;  %v1458_v53 = vmul.f32 0.5, %v2545_v51 }
 0x3cf   : > { %v1457_v56 = vmul.f32 0.5, %v2547_v52 }
 0x3d0   : > { %v1474_v58 = vadd.f32 0.5, %v1458_v53 }
 0x3d1   : > { %v1473_v57 = vadd.f32 0.5, %v1457_v56 }
 0x3d3   : > { %2252 = vmatprep.mubr.f32.mxu1 %v1473_v57 }
 0x3d4   : > { %2253 = vmatmul.mubr.f32.gmra.mrb[28].mxu1 %v1474_v58 }
 0x3d5   : > { %v2549_v59 = vpop.eup %2548 }
 0x3d6   : > { %v2551_v60 = vpop.eup %2550  ;;  %v1460_v61 = vmul.f32 0.5, %v2549_v59 }
 0x3d7   : > { %v1459_v27 = vmul.f32 0.5, %v2551_v60 }
 0x3d8   : > { %v1476_v0 = vadd.f32 0.5, %v1460_v61 }
 0x3d9   : > { %v1475_v63 = vadd.f32 0.5, %v1459_v27 }
 0x3db   : > { %2255 = vmatprep.mubr.f32.mxu1 %v1475_v63 }
 0x3dc   : > { %2256 = vmatmul.mubr.f32.gmra.mrb[30].mxu1 %v1476_v0 }
 0x478   : > { %v2236_v2 = vpop.f32.mrb[16].mxu1 }
 0x479   : > { %v1572_v3 = vadd.f32 %v2236_v2, %v3073_v1  ;;  %v1566_v4 = vpop.f32.mrb[17].mxu1 }
 0x47a   : > { %v1567_v5 = vadd.f32 %v3073_v1, %v1566_v4 }
 0x47b   : > { %v1646_v6 = vmul.f32 0.5, %v1572_v3 }
 0x47c   : > { %v1645_v7 = vmul.f32 0.5, %v1567_v5 }
 0x47d   : > { %2552 = vtanh.f32 %v1646_v6 }
 0x47e   : > { %2554 = vtanh.f32 %v1645_v7 }
 0x47f   : > { %v2239_v8 = vpop.f32.mrb[18].mxu1 }
 0x480   : > { %v1582_v9 = vadd.f32 %v2239_v8, %v3073_v1  ;;  %v1576_v10 = vpop.f32.mrb[19].mxu1 }
 0x481   : > { %v1577_v11 = vadd.f32 %v3073_v1, %v1576_v10 }
 0x482   : > { %v1648_v12 = vmul.f32 0.5, %v1582_v9 }
 0x483   : > { %v1647_v13 = vmul.f32 0.5, %v1577_v11 }
 0x484   : > { %2556 = vtanh.f32 %v1648_v12 }
 0x485   : > { %2558 = vtanh.f32 %v1647_v13 }
 0x487   : > { %v2553_v43 = vpop.eup %2552  ;;  %v2242_v14 = vpop.f32.mrb[20].mxu1 }
 0x488   : > { %v2555_v15 = vpop.eup %2554  ;;  %v1592_v16 = vadd.f32 %v2242_v14, %v3073_v1  ;;  %v1586_v55 = vpop.f32.mrb[21].mxu1  ;;  %v1678_v17 = vmul.f32 0.5, %v2553_v43 }
 0x489   : > { %v1587_v18 = vadd.f32 %v3073_v1, %v1586_v55  ;;  %v1677_v19 = vmul.f32 0.5, %v2555_v15 }
 0x48a   : > { %v1650_v20 = vmul.f32 0.5, %v1592_v16  ;;  %v1694_v54 = vadd.f32 0.5, %v1678_v17 }
 0x48b   : > { %v1649_v21 = vmul.f32 0.5, %v1587_v18  ;;  %v1693_v22 = vadd.f32 0.5, %v1677_v19 }
 0x48c   : > { %2560 = vtanh.f32 %v1650_v20  ;;  %v1717_v23 = vmul.f32 %v3084_v50, %v1694_v54 }
 0x48d   : > { %2562 = vtanh.f32 %v1649_v21  ;;  %v1716_v24 = vmul.f32 %v3084_v50, %v1693_v22 }
 0x48e   : > { %v2557_v25 = vpop.eup %2556  ;;  %1734 = vadd.xlane.f32.xlu0 %v1717_v23 }
 0x48f   : > { %v2559_v26 = vpop.eup %2558  ;;  %1732 = vadd.xlane.f32.xlu1 %v1716_v24  ;;  %v2245_v62 = vpop.f32.mrb[22].mxu1  ;;  %v1680_v28 = vmul.f32 0.5, %v2557_v25 }
 0x490   : > { %v1602_v29 = vadd.f32 %v2245_v62, %v3073_v1  ;;  %v1596_v30 = vpop.f32.mrb[23].mxu1  ;;  %v1679_v31 = vmul.f32 0.5, %v2559_v26 }
 0x491   : > { %v1597_v32 = vadd.f32 %v3073_v1, %v1596_v30  ;;  %v1696_v33 = vadd.f32 0.5, %v1680_v28 }
 0x492   : > { %v1652_v34 = vmul.f32 0.5, %v1602_v29  ;;  %v1695_v35 = vadd.f32 0.5, %v1679_v31 }
 0x493   : > { %v1651_v36 = vmul.f32 0.5, %v1597_v32  ;;  %v1719_v37 = vmul.f32 %v3084_v50, %v1696_v33 }
 0x494   : > { %2564 = vtanh.f32 %v1652_v34  ;;  %v1718_v38 = vmul.f32 %v3084_v50, %v1695_v35 }
 0x495   : > { %2566 = vtanh.f32 %v1651_v36  ;;  %1738 = vadd.xlane.f32.xlu1 %v1719_v37 }
 0x496   : > { %v2561_v39 = vpop.eup %2560  ;;  %1736 = vadd.xlane.f32.xlu0 %v1718_v38 }
 0x497   : > { %v2563_v40 = vpop.eup %2562  ;;  %v2248_v41 = vpop.f32.mrb[24].mxu1  ;;  %v1682_v42 = vmul.f32 0.5, %v2561_v39 }
 0x498   : > { %v1612_v44 = vadd.f32 %v2248_v41, %v3073_v1  ;;  %v1606_v45 = vpop.f32.mrb[25].mxu1  ;;  %v1681_v46 = vmul.f32 0.5, %v2563_v40 }
 0x499   : > { %v1607_v47 = vadd.f32 %v3073_v1, %v1606_v45  ;;  %v1698_v48 = vadd.f32 0.5, %v1682_v42 }
 0x49a   : > { %v1654_v49 = vmul.f32 0.5, %v1612_v44  ;;  %v1697_v51 = vadd.f32 0.5, %v1681_v46 }
 0x49b   : > { %v1653_v52 = vmul.f32 0.5, %v1607_v47  ;;  %v1721_v53 = vmul.f32 %v3084_v50, %v1698_v48 }
 0x49c   : > { %2568 = vtanh.f32 %v1654_v49  ;;  %v1720_v56 = vmul.f32 %v3084_v50, %v1697_v51  ;;  %v1903_v49 = vld [vmem:[#allocation2] ss:$0 sm:$0xff] }
 0x49d   : > { %2570 = vtanh.f32 %v1653_v52  ;;  %1742 = vadd.xlane.f32.xlu1 %v1721_v53 }
 0x49e   : > { %v2565_v57 = vpop.eup %2564  ;;  %1740 = vadd.xlane.f32.xlu0 %v1720_v56 }
 0x49f   : > { %v2567_v58 = vpop.eup %2566  ;;  %v2251_v59 = vpop.f32.mrb[26].mxu1  ;;  %v1684_v60 = vmul.f32 0.5, %v2565_v57 }
 0x4a0   : > { %v1622_v61 = vadd.f32 %v2251_v59, %v3073_v1  ;;  %v1616_v27 = vpop.f32.mrb[27].mxu1  ;;  %v1683_v63 = vmul.f32 0.5, %v2567_v58 }
 0x4a1   : > { %v1617_v0 = vadd.f32 %v3073_v1, %v1616_v27  ;;  %v1700_v2 = vadd.f32 0.5, %v1684_v60 }
 0x4a2   : > { %v1656_v3 = vmul.f32 0.5, %v1622_v61  ;;  %v1699_v4 = vadd.f32 0.5, %v1683_v63 }
 0x4a3   : > { %v1655_v5 = vmul.f32 0.5, %v1617_v0  ;;  %v1723_v6 = vmul.f32 %v3084_v50, %v1700_v2 }
 0x4a4   : > { %2572 = vtanh.f32 %v1656_v3  ;;  %v1722_v7 = vmul.f32 %v3084_v50, %v1699_v4 }
 0x4a5   : > { %2574 = vtanh.f32 %v1655_v5  ;;  %1746 = vadd.xlane.f32.xlu1 %v1723_v6 }
 0x4a6   : > { %v2569_v8 = vpop.eup %2568  ;;  %1744 = vadd.xlane.f32.xlu0 %v1722_v7 }
 0x4a7   : > { %v2571_v9 = vpop.eup %2570  ;;  %v2254_v10 = vpop.f32.mrb[28].mxu1  ;;  %v1686_v11 = vmul.f32 0.5, %v2569_v8 }
 0x4a8   : > { %v1632_v12 = vadd.f32 %v2254_v10, %v3073_v1  ;;  %v1626_v13 = vpop.f32.mrb[29].mxu1  ;;  %v1685_v43 = vmul.f32 0.5, %v2571_v9 }
 0x4a9   : > { %v1627_v14 = vadd.f32 %v3073_v1, %v1626_v13  ;;  %v1702_v15 = vadd.f32 0.5, %v1686_v11 }
 0x4aa   : > { %v1658_v16 = vmul.f32 0.5, %v1632_v12  ;;  %v1701_v55 = vadd.f32 0.5, %v1685_v43 }
 0x4ab   : > { %v1657_v17 = vmul.f32 0.5, %v1627_v14  ;;  %v1725_v18 = vmul.f32 %v3084_v50, %v1702_v15 }
 0x4ac   : > { %2576 = vtanh.f32 %v1658_v16  ;;  %v1724_v19 = vmul.f32 %v3084_v50, %v1701_v55 }
 0x4ad   : > { %2578 = vtanh.f32 %v1657_v17  ;;  %1750 = vadd.xlane.f32.xlu1 %v1725_v18 }
 0x4ae   : > { %v2573_v20 = vpop.eup %2572  ;;  %1748 = vadd.xlane.f32.xlu0 %v1724_v19 }
 0x4af   : > { %v2575_v54 = vpop.eup %2574  ;;  %v2257_v21 = vpop.f32.mrb[30].mxu1  ;;  %v1688_v22 = vmul.f32 0.5, %v2573_v20 }
 0x4b0   : > { %v1642_v23 = vadd.f32 %v2257_v21, %v3073_v1  ;;  %v1636_v24 = vpop.f32.mrb[31].mxu1  ;;  %v1687_v25 = vmul.f32 0.5, %v2575_v54 }
 0x4b1   : > { %v1637_v26 = vadd.f32 %v3073_v1, %v1636_v24  ;;  %v1704_v62 = vadd.f32 0.5, %v1688_v22 }
 0x4b2   : > { %v1660_v28 = vmul.f32 0.5, %v1642_v23  ;;  %v1703_v29 = vadd.f32 0.5, %v1687_v25 }
 0x4b3   : > { %v1659_v30 = vmul.f32 0.5, %v1637_v26  ;;  %v1727_v31 = vmul.f32 %v3084_v50, %v1704_v62 }
 0x4b4   : > { %2580 = vtanh.f32 %v1660_v28  ;;  %v1726_v32 = vmul.f32 %v3084_v50, %v1703_v29 }
 0x4b5   : > { %2582 = vtanh.f32 %v1659_v30  ;;  %1754 = vadd.xlane.f32.xlu1 %v1727_v31 }
 0x4b6   : > { %v2577_v33 = vpop.eup %2576  ;;  %1752 = vadd.xlane.f32.xlu0 %v1726_v32 }
 0x4b7   : > { %v2579_v34 = vpop.eup %2578  ;;  %v1690_v35 = vmul.f32 0.5, %v2577_v33 }
 0x4b8   : > { %v1689_v36 = vmul.f32 0.5, %v2579_v34 }
 0x4b9   : > { %v1706_v37 = vadd.f32 0.5, %v1690_v35 }
 0x4ba   : > { %v1705_v38 = vadd.f32 0.5, %v1689_v36 }
 0x4bb   : > { %v1729_v1 = vmul.f32 %v3084_v50, %v1706_v37 }
 0x4bc   : > { %v1728_v39 = vmul.f32 %v3084_v50, %v1705_v38 }
 0x4bd   : > { %1758 = vadd.xlane.f32.xlu1 %v1729_v1 }
 0x4be   : > { %v2581_v40 = vpop.eup %2580  ;;  %1756 = vadd.xlane.f32.xlu0 %v1728_v39 }
 0x4bf   : > { %v2583_v41 = vpop.eup %2582  ;;  %v1692_v42 = vmul.f32 0.5, %v2581_v40 }
 0x4c0   : > { %v1691_v44 = vmul.f32 0.5, %v2583_v41 }
 0x4c1   : > { %v1708_v45 = vadd.f32 0.5, %v1692_v42 }
 0x4c2   : > { %v1707_v46 = vadd.f32 0.5, %v1691_v44 }
 0x4c3   : > { %v1731_v47 = vmul.f32 %v3084_v50, %v1708_v45 }
 0x4c4   : > { %v1730_v48 = vmul.f32 %v3084_v50, %v1707_v46 }
 0x4c5   : > { %1762 = vadd.xlane.f32.xlu1 %v1731_v47 }
 0x4c6   : > { %1760 = vadd.xlane.f32.xlu0 %v1730_v48 }
 0x51b   : > { %v1735_v51 = vpop.xlane.xlu0 %1734 }
 0x51c   : > { %v1772_v52 = vadd.f32 %v1903_v49, %v1735_v51  ;;  %v1733_v53 = vpop.xlane.xlu1 %1732 }
 0x51d   : > { %v1771_v50 = vadd.f32 %v1903_v49, %v1733_v53 }
 0x51e   : > { %1789 = vst.msk [vmem:[%s3117_s30 + $0x8] sm:$0xff] %vm1787_vm0, %v1772_v52 }
 0x51f   : > { %1788 = vst.msk [vmem:[%s3117_s30] sm:$0xff] %vm1787_vm0, %v1771_v50 }
 0x522   : > { %v1739_v56 = vpop.xlane.xlu1 %1738 }
 0x523   : > { %v1774_v57 = vadd.f32 %v1903_v49, %v1739_v56  ;;  %v1737_v58 = vpop.xlane.xlu0 %1736 }
 0x524   : > { %v1773_v59 = vadd.f32 %v1903_v49, %v1737_v58 }
 0x525   : > { %1791 = vst.msk [vmem:[%s3117_s30 + $0x18] sm:$0xff] %vm1787_vm0, %v1774_v57 }
 0x526   : > { %1790 = vst.msk [vmem:[%s3117_s30 + $0x10] sm:$0xff] %vm1787_vm0, %v1773_v59 }
 0x52a   : > { %v1743_v60 = vpop.xlane.xlu1 %1742 }
 0x52b   : > { %v1776_v61 = vadd.f32 %v1903_v49, %v1743_v60  ;;  %v1741_v27 = vpop.xlane.xlu0 %1740 }
 0x52c   : > { %v1775_v63 = vadd.f32 %v1903_v49, %v1741_v27 }
 0x52d   : > { %1793 = vst.msk [vmem:[%s3117_s30 + $0x28] sm:$0xff] %vm1787_vm0, %v1776_v61 }
 0x52e   : > { %1792 = vst.msk [vmem:[%s3117_s30 + $0x20] sm:$0xff] %vm1787_vm0, %v1775_v63 }
 0x532   : > { %v1747_v0 = vpop.xlane.xlu1 %1746 }
 0x533   : > { %v1778_v2 = vadd.f32 %v1903_v49, %v1747_v0  ;;  %v1745_v3 = vpop.xlane.xlu0 %1744 }
 0x534   : > { %v1777_v4 = vadd.f32 %v1903_v49, %v1745_v3 }
 0x535   : > { %1795 = vst.msk [vmem:[%s3117_s30 + $0x38] sm:$0xff] %vm1787_vm0, %v1778_v2 }
 0x536   : > { %1794 = vst.msk [vmem:[%s3117_s30 + $0x30] sm:$0xff] %vm1787_vm0, %v1777_v4 }
 0x53a   : > { %v1751_v5 = vpop.xlane.xlu1 %1750 }
 0x53b   : > { %v1780_v6 = vadd.f32 %v1903_v49, %v1751_v5  ;;  %v1749_v7 = vpop.xlane.xlu0 %1748 }
 0x53c   : > { %v1779_v8 = vadd.f32 %v1903_v49, %v1749_v7 }
 0x53d   : > { %1797 = vst.msk [vmem:[%s3117_s30 + $0x48] sm:$0xff] %vm1787_vm0, %v1780_v6 }
 0x53e   : > { %1796 = vst.msk [vmem:[%s3117_s30 + $0x40] sm:$0xff] %vm1787_vm0, %v1779_v8 }
 0x542   : > { %v1755_v9 = vpop.xlane.xlu1 %1754 }
 0x543   : > { %v1782_v10 = vadd.f32 %v1903_v49, %v1755_v9  ;;  %v1753_v11 = vpop.xlane.xlu0 %1752 }
 0x544   : > { %v1781_v12 = vadd.f32 %v1903_v49, %v1753_v11 }
 0x545   : > { %1799 = vst.msk [vmem:[%s3117_s30 + $0x58] sm:$0xff] %vm1787_vm0, %v1782_v10 }
 0x546   : > { %1798 = vst.msk [vmem:[%s3117_s30 + $0x50] sm:$0xff] %vm1787_vm0, %v1781_v12 }
 0x54a   : > { %v1759_v13 = vpop.xlane.xlu1 %1758 }
 0x54b   : > { %v1784_v43 = vadd.f32 %v1903_v49, %v1759_v13  ;;  %v1757_v14 = vpop.xlane.xlu0 %1756 }
 0x54c   : > { %v1783_v15 = vadd.f32 %v1903_v49, %v1757_v14 }
 0x54d   : > { %1801 = vst.msk [vmem:[%s3117_s30 + $0x68] sm:$0xff] %vm1787_vm0, %v1784_v43 }
 0x54e   : > { %1800 = vst.msk [vmem:[%s3117_s30 + $0x60] sm:$0xff] %vm1787_vm0, %v1783_v15 }
 0x552   : > { %v1763_v16 = vpop.xlane.xlu1 %1762 }
 0x553   : > { %v1786_v55 = vadd.f32 %v1903_v49, %v1763_v16  ;;  %v1761_v17 = vpop.xlane.xlu0 %1760 }
 0x554   : > { %v1785_v18 = vadd.f32 %v1903_v49, %v1761_v17 }
 0x555   : > { %1803 = vst.msk [vmem:[%s3117_s30 + $0x78] sm:$0xff] %vm1787_vm0, %v1786_v55 }
 0x556   : > { %1802 = vst.msk [vmem:[%s3117_s30 + $0x70] sm:$0xff] %vm1787_vm0, %v1785_v18 }
 0x557 PF: > { %s27_s27 = sadd.s32 1, %s2654_s27  }
 0x558   : > { %p24_p7 = scmp.ge.s32.totalorder %s27_s27, 4  }
 0x55a   :  { %26 = sbr.rel (!%p24_p7) target bundleno = 5 (0x5), region = 111 }
 0x561   :  { %1826 = vsyncpa [#allocation4], 1 }
 0x562   :  { %1828 = vsyncpa [#allocation4 + $0x1], 1 }
 0x563   :  { %1829 = vsyncpa [#allocation6], 1 }

</bundles_post_ra>
